<compile_context>
chip_gen: v6e
topology: v6e:2x2x1
jax: 0.10.0
libtpu: 0.0.40
codegen_flags: <defaults>
</compile_context>

<pallas_src>
import math
from functools import partial

import numpy as np
import jax
import jax.numpy as jnp
from jax.experimental import pallas as pl
from jax.experimental.pallas import tpu as pltpu


# ----------------------------------------------------------------------------
# Pallas kernel (lane-dense: point axis on sublane x lane)
# ----------------------------------------------------------------------------
def _posenc_kernel(x_ref, o_ref, *, in_features, num_frequencies):
    # x_ref: (in_f, tile_r, 128) f32 ; o_ref: (out_dim, tile_r, 128) f32
    x = x_ref[...]

    # Pass-through coordinate rows (no identity-matmul / lin accumulation).
    o_ref[0:in_features, :, :] = x

    for i in range(num_frequencies):
        scale = np.float32((2.0 ** i) * math.pi)   # compile-time immediate
        arg = x * scale                            # (in_f, tile_r, 128), dense
        s = jnp.sin(arg)
        c = jnp.cos(arg)
        base = in_features + 2 * i * in_features
        for j in range(in_features):
            o_ref[base + 2 * j, :, :] = s[j]       # dense (tile_r, 128) store
            o_ref[base + 2 * j + 1, :, :] = c[j]


def _pos_enc_pallas(flat, num_frequencies, *, tile_cap=16384):
    """flat: [N, in_features] f32 -> [N, out_dim] f32 (NeRF pos. encoding)."""
    n, in_f = flat.shape
    out_dim = in_f + 2 * in_f * num_frequencies

    # Points per grid step: multiple of 8*128 = 1024, adaptive for small N so
    # we never pad a tiny input up to a huge tile.
    tile_n = min(tile_cap, max(1024, pl.cdiv(n, 1024) * 1024))
    n_pad = pl.cdiv(n, tile_n) * tile_n
    nr = n_pad // 128
    tile_r = tile_n // 128

    # Wrapper-side layout plumbing: [N, in_f] -> [in_f, Nr, 128].
    xt = jnp.transpose(flat.astype(jnp.float32))          # (in_f, N)
    if n_pad != n:
        xt = jnp.pad(xt, ((0, 0), (0, n_pad - n)))
    x3 = xt.reshape(in_f, nr, 128)

    kernel = partial(_posenc_kernel, in_features=in_f,
                     num_frequencies=num_frequencies)

    cost = pl.CostEstimate(
        flops=int(n_pad * in_f * num_frequencies),
        transcendentals=int(n_pad * 2 * in_f * num_frequencies),
        bytes_accessed=int(n_pad * (in_f + out_dim) * 4),
    )

    o3 = pl.pallas_call(
        kernel,
        out_shape=jax.ShapeDtypeStruct((out_dim, nr, 128), jnp.float32),
        grid_spec=pltpu.PrefetchScalarGridSpec(
            num_scalar_prefetch=0,
            grid=(nr // tile_r,),
            in_specs=[
                pl.BlockSpec((in_f, tile_r, 128), lambda i: (0, i, 0)),
            ],
            out_specs=pl.BlockSpec((out_dim, tile_r, 128), lambda i: (0, i, 0)),
        ),
        compiler_params=pltpu.CompilerParams(
            dimension_semantics=("parallel",),
        ),
        cost_estimate=cost,
    )(x3)

    out = jnp.transpose(o3.reshape(out_dim, n_pad))        # (n_pad, out_dim)
    return out[:n] if n_pad != n else out


# ----------------------------------------------------------------------------
# Module wrapper (mirrors the PyTorch PosEncodingNeRF)
# ----------------------------------------------------------------------------
def _num_frequencies_nyquist(samples):
    nyquist_rate = 1 / (2 * (2 * 1 / samples))
    return int(math.floor(math.log(nyquist_rate, 2)))


class PosEncodingNeRF:
    """JAX/Pallas port of the PyTorch PosEncodingNeRF module."""

    def __init__(self, in_features, sidelength=None, fn_samples=None,
                 use_nyquist=True, tile_cap=16384):
        self.in_features = in_features
        if in_features == 3:
            self.num_frequencies = 10
        elif in_features == 2:
            self.num_frequencies = 4
            if use_nyquist:
                assert sidelength is not None
                if isinstance(sidelength, int):
                    sidelength = (sidelength, sidelength)
                self.num_frequencies = _num_frequencies_nyquist(
                    min(sidelength[0], sidelength[1]))
        elif in_features == 1:
            assert fn_samples is not None
            self.num_frequencies = 4
            if use_nyquist:
                self.num_frequencies = _num_frequencies_nyquist(fn_samples)
        else:
            raise ValueError("in_features must be 1, 2 or 3")
        self.out_dim = in_features + 2 * in_features * self.num_frequencies
        self.tile_cap = tile_cap

    def __call__(self, coords):
        in_dim = coords.ndim
        flat = coords.astype(jnp.float32).reshape(-1, self.in_features)
        enc = _pos_enc_pallas(flat, self.num_frequencies,
                              tile_cap=self.tile_cap)
        if in_dim == 2:
            return enc.reshape(coords.shape[0], self.out_dim)
        return enc.reshape(coords.shape[0], -1, self.out_dim)


# ----------------------------------------------------------------------------
# Pure-JAX reference (mirrors the PyTorch forward loop exactly)
# ----------------------------------------------------------------------------
def reference_pos_encoding(coords, in_features, num_frequencies):
    in_dim = coords.ndim
    b0 = coords.shape[0]
    c = coords.reshape(b0, -1, in_features)
    parts = [c]
    for i in range(num_frequencies):
        for j in range(in_features):
            cj = c[..., j]
            parts.append(jnp.sin((2 ** i) * math.pi * cj)[..., None])
            parts.append(jnp.cos((2 ** i) * math.pi * cj)[..., None])
    enc = jnp.concatenate(parts, axis=-1)
    out_dim = in_features + 2 * in_features * num_frequencies
    if in_dim == 2:
        return enc.reshape(b0, out_dim)
    return enc.reshape(b0, -1, out_dim)


# ----------------------------------------------------------------------------
# Main
# ----------------------------------------------------------------------------
if __name__ == "__main__":
    key = jax.random.PRNGKey(0)
    k1, k2, k3 = jax.random.split(key, 3)

    # in_features=2, sidelength=256 -> num_frequencies=6, out_dim=26
    enc2 = PosEncodingNeRF(in_features=2, sidelength=256)
    assert enc2.num_frequencies == 6 and enc2.out_dim == 26

    # 3-D input [B, M, in_features]; flattened 600 points.
    coords3 = jax.random.uniform(k1, (2, 300, 2), jnp.float32, -1.0, 1.0)
    out3 = jax.block_until_ready(enc2(coords3))
    ref3 = reference_pos_encoding(coords3, 2, enc2.num_frequencies)
    assert out3.shape == (2, 300, enc2.out_dim)
    err3 = float(jnp.max(jnp.abs(out3 - ref3)))
    assert jnp.allclose(out3, ref3, atol=2e-4, rtol=2e-4), err3

    # 2-D input [N, in_features] with ragged N (padding path).
    coords2 = jax.random.uniform(k2, (173, 2), jnp.float32, -1.0, 1.0)
    out2 = jax.block_until_ready(enc2(coords2))
    ref2 = reference_pos_encoding(coords2, 2, enc2.num_frequencies)
    assert out2.shape == (173, enc2.out_dim)
    err2 = float(jnp.max(jnp.abs(out2 - ref2)))
    assert jnp.allclose(out2, ref2, atol=2e-4, rtol=2e-4), err2

    # in_features=3 -> num_frequencies=10, out_dim=63 (large trig args).
    enc3 = PosEncodingNeRF(in_features=3)
    assert enc3.num_frequencies == 10 and enc3.out_dim == 63
    coords3f = jax.random.uniform(k3, (2, 64, 3), jnp.float32, -1.0, 1.0)
    outf = jax.block_until_ready(enc3(coords3f))
    reff = reference_pos_encoding(coords3f, 3, enc3.num_frequencies)
    assert outf.shape == (2, 64, enc3.out_dim)
    errf = float(jnp.max(jnp.abs(outf - reff)))
    assert jnp.allclose(outf, reff, atol=2e-3, rtol=2e-3), errf

    print("KERNEL_OK")
</pallas_src>

<mosaic_0001>
module attributes {stable_mosaic.version = 11 : i64} {
  func.func @_posenc_kernel(%arg0: i32, %arg1: memref<2x8x128xf32, #tpu.memory_space<vmem>>, %arg2: memref<26x8x128xf32, #tpu.memory_space<vmem>>) attributes {dimension_semantics = [#tpu.dimension_semantics<parallel>], iteration_bounds = array<i64: 1>, scalar_prefetch = 0 : i64, scratch_operands = 0 : i64, tpu.core_type = #tpu.core_type<tc>, window_params = [{transform_indices = @transform_0, window_bounds = array<i64: 2, 8, 128>}, {transform_indices = @transform_1, window_bounds = array<i64: 26, 8, 128>}]} {
    %c0 = arith.constant 0 : index
    %c0_0 = arith.constant 0 : index
    %c0_1 = arith.constant 0 : index
    %0 = vector.load %arg1[%c0, %c0_0, %c0_1] : memref<2x8x128xf32, #tpu.memory_space<vmem>>, vector<2x8x128xf32>
    %c0_2 = arith.constant 0 : index
    %c0_3 = arith.constant 0 : index
    %c0_4 = arith.constant 0 : index
    %1 = vector.load %arg2[%c0_2, %c0_3, %c0_4] : memref<26x8x128xf32, #tpu.memory_space<vmem>>, vector<2x8x128xf32>
    tpu.vector_store %arg2[%c0_2, %c0_3, %c0_4], %0 {strides = array<i32>} : memref<26x8x128xf32, #tpu.memory_space<vmem>>, vector<2x8x128xf32>,
    %cst = arith.constant 3.14159274 : f32
    %2 = vector.broadcast %cst : f32 to vector<2x8x128xf32>
    %3 = arith.mulf %0, %2 : vector<2x8x128xf32>
    %4 = math.sin %3 : vector<2x8x128xf32>
    %5 = math.cos %3 : vector<2x8x128xf32>
    %6 = vector.extract_strided_slice %4 {offsets = [0, 0, 0], sizes = [1, 8, 128], strides = [1, 1, 1]} : vector<2x8x128xf32> to vector<1x8x128xf32>
    %7 = vector.shape_cast %6 : vector<1x8x128xf32> to vector<8x128xf32>
    %c2 = arith.constant 2 : index
    %c0_5 = arith.constant 0 : index
    %c0_6 = arith.constant 0 : index
    %8 = vector.load %arg2[%c2, %c0_5, %c0_6] : memref<26x8x128xf32, #tpu.memory_space<vmem>>, vector<1x8x128xf32>
    %9 = vector.shape_cast %8 : vector<1x8x128xf32> to vector<8x128xf32>
    %10 = vector.shape_cast %7 : vector<8x128xf32> to vector<1x8x128xf32>
    tpu.vector_store %arg2[%c2, %c0_5, %c0_6], %10 {strides = array<i32>} : memref<26x8x128xf32, #tpu.memory_space<vmem>>, vector<1x8x128xf32>,
    %11 = vector.extract_strided_slice %5 {offsets = [0, 0, 0], sizes = [1, 8, 128], strides = [1, 1, 1]} : vector<2x8x128xf32> to vector<1x8x128xf32>
    %12 = vector.shape_cast %11 : vector<1x8x128xf32> to vector<8x128xf32>
    %c3 = arith.constant 3 : index
    %c0_7 = arith.constant 0 : index
    %c0_8 = arith.constant 0 : index
    %13 = vector.load %arg2[%c3, %c0_7, %c0_8] : memref<26x8x128xf32, #tpu.memory_space<vmem>>, vector<1x8x128xf32>
    %14 = vector.shape_cast %13 : vector<1x8x128xf32> to vector<8x128xf32>
    %15 = vector.shape_cast %12 : vector<8x128xf32> to vector<1x8x128xf32>
    tpu.vector_store %arg2[%c3, %c0_7, %c0_8], %15 {strides = array<i32>} : memref<26x8x128xf32, #tpu.memory_space<vmem>>, vector<1x8x128xf32>,
    %16 = vector.extract_strided_slice %4 {offsets = [1, 0, 0], sizes = [1, 8, 128], strides = [1, 1, 1]} : vector<2x8x128xf32> to vector<1x8x128xf32>
    %17 = vector.shape_cast %16 : vector<1x8x128xf32> to vector<8x128xf32>
    %c4 = arith.constant 4 : index
    %c0_9 = arith.constant 0 : index
    %c0_10 = arith.constant 0 : index
    %18 = vector.load %arg2[%c4, %c0_9, %c0_10] : memref<26x8x128xf32, #tpu.memory_space<vmem>>, vector<1x8x128xf32>
    %19 = vector.shape_cast %18 : vector<1x8x128xf32> to vector<8x128xf32>
    %20 = vector.shape_cast %17 : vector<8x128xf32> to vector<1x8x128xf32>
    tpu.vector_store %arg2[%c4, %c0_9, %c0_10], %20 {strides = array<i32>} : memref<26x8x128xf32, #tpu.memory_space<vmem>>, vector<1x8x128xf32>,
    %21 = vector.extract_strided_slice %5 {offsets = [1, 0, 0], sizes = [1, 8, 128], strides = [1, 1, 1]} : vector<2x8x128xf32> to vector<1x8x128xf32>
    %22 = vector.shape_cast %21 : vector<1x8x128xf32> to vector<8x128xf32>
    %c5 = arith.constant 5 : index
    %c0_11 = arith.constant 0 : index
    %c0_12 = arith.constant 0 : index
    %23 = vector.load %arg2[%c5, %c0_11, %c0_12] : memref<26x8x128xf32, #tpu.memory_space<vmem>>, vector<1x8x128xf32>
    %24 = vector.shape_cast %23 : vector<1x8x128xf32> to vector<8x128xf32>
    %25 = vector.shape_cast %22 : vector<8x128xf32> to vector<1x8x128xf32>
    tpu.vector_store %arg2[%c5, %c0_11, %c0_12], %25 {strides = array<i32>} : memref<26x8x128xf32, #tpu.memory_space<vmem>>, vector<1x8x128xf32>,
    %cst_13 = arith.constant 6.28318548 : f32
    %26 = vector.broadcast %cst_13 : f32 to vector<2x8x128xf32>
    %27 = arith.mulf %0, %26 : vector<2x8x128xf32>
    %28 = math.sin %27 : vector<2x8x128xf32>
    %29 = math.cos %27 : vector<2x8x128xf32>
    %30 = vector.extract_strided_slice %28 {offsets = [0, 0, 0], sizes = [1, 8, 128], strides = [1, 1, 1]} : vector<2x8x128xf32> to vector<1x8x128xf32>
    %31 = vector.shape_cast %30 : vector<1x8x128xf32> to vector<8x128xf32>
    %c6 = arith.constant 6 : index
    %c0_14 = arith.constant 0 : index
    %c0_15 = arith.constant 0 : index
    %32 = vector.load %arg2[%c6, %c0_14, %c0_15] : memref<26x8x128xf32, #tpu.memory_space<vmem>>, vector<1x8x128xf32>
    %33 = vector.shape_cast %32 : vector<1x8x128xf32> to vector<8x128xf32>
    %34 = vector.shape_cast %31 : vector<8x128xf32> to vector<1x8x128xf32>
    tpu.vector_store %arg2[%c6, %c0_14, %c0_15], %34 {strides = array<i32>} : memref<26x8x128xf32, #tpu.memory_space<vmem>>, vector<1x8x128xf32>,
    %35 = vector.extract_strided_slice %29 {offsets = [0, 0, 0], sizes = [1, 8, 128], strides = [1, 1, 1]} : vector<2x8x128xf32> to vector<1x8x128xf32>
    %36 = vector.shape_cast %35 : vector<1x8x128xf32> to vector<8x128xf32>
    %c7 = arith.constant 7 : index
    %c0_16 = arith.constant 0 : index
    %c0_17 = arith.constant 0 : index
    %37 = vector.load %arg2[%c7, %c0_16, %c0_17] : memref<26x8x128xf32, #tpu.memory_space<vmem>>, vector<1x8x128xf32>
    %38 = vector.shape_cast %37 : vector<1x8x128xf32> to vector<8x128xf32>
    %39 = vector.shape_cast %36 : vector<8x128xf32> to vector<1x8x128xf32>
    tpu.vector_store %arg2[%c7, %c0_16, %c0_17], %39 {strides = array<i32>} : memref<26x8x128xf32, #tpu.memory_space<vmem>>, vector<1x8x128xf32>,
    %40 = vector.extract_strided_slice %28 {offsets = [1, 0, 0], sizes = [1, 8, 128], strides = [1, 1, 1]} : vector<2x8x128xf32> to vector<1x8x128xf32>
    %41 = vector.shape_cast %40 : vector<1x8x128xf32> to vector<8x128xf32>
    %c8 = arith.constant 8 : index
    %c0_18 = arith.constant 0 : index
    %c0_19 = arith.constant 0 : index
    %42 = vector.load %arg2[%c8, %c0_18, %c0_19] : memref<26x8x128xf32, #tpu.memory_space<vmem>>, vector<1x8x128xf32>
    %43 = vector.shape_cast %42 : vector<1x8x128xf32> to vector<8x128xf32>
    %44 = vector.shape_cast %41 : vector<8x128xf32> to vector<1x8x128xf32>
    tpu.vector_store %arg2[%c8, %c0_18, %c0_19], %44 {strides = array<i32>} : memref<26x8x128xf32, #tpu.memory_space<vmem>>, vector<1x8x128xf32>,
    %45 = vector.extract_strided_slice %29 {offsets = [1, 0, 0], sizes = [1, 8, 128], strides = [1, 1, 1]} : vector<2x8x128xf32> to vector<1x8x128xf32>
    %46 = vector.shape_cast %45 : vector<1x8x128xf32> to vector<8x128xf32>
    %c9 = arith.constant 9 : index
    %c0_20 = arith.constant 0 : index
    %c0_21 = arith.constant 0 : index
    %47 = vector.load %arg2[%c9, %c0_20, %c0_21] : memref<26x8x128xf32, #tpu.memory_space<vmem>>, vector<1x8x128xf32>
    %48 = vector.shape_cast %47 : vector<1x8x128xf32> to vector<8x128xf32>
    %49 = vector.shape_cast %46 : vector<8x128xf32> to vector<1x8x128xf32>
    tpu.vector_store %arg2[%c9, %c0_20, %c0_21], %49 {strides = array<i32>} : memref<26x8x128xf32, #tpu.memory_space<vmem>>, vector<1x8x128xf32>,
    %cst_22 = arith.constant 12.566371 : f32
    %50 = vector.broadcast %cst_22 : f32 to vector<2x8x128xf32>
    %51 = arith.mulf %0, %50 : vector<2x8x128xf32>
    %52 = math.sin %51 : vector<2x8x128xf32>
    %53 = math.cos %51 : vector<2x8x128xf32>
    %54 = vector.extract_strided_slice %52 {offsets = [0, 0, 0], sizes = [1, 8, 128], strides = [1, 1, 1]} : vector<2x8x128xf32> to vector<1x8x128xf32>
    %55 = vector.shape_cast %54 : vector<1x8x128xf32> to vector<8x128xf32>
    %c10 = arith.constant 10 : index
    %c0_23 = arith.constant 0 : index
    %c0_24 = arith.constant 0 : index
    %56 = vector.load %arg2[%c10, %c0_23, %c0_24] : memref<26x8x128xf32, #tpu.memory_space<vmem>>, vector<1x8x128xf32>
    %57 = vector.shape_cast %56 : vector<1x8x128xf32> to vector<8x128xf32>
    %58 = vector.shape_cast %55 : vector<8x128xf32> to vector<1x8x128xf32>
    tpu.vector_store %arg2[%c10, %c0_23, %c0_24], %58 {strides = array<i32>} : memref<26x8x128xf32, #tpu.memory_space<vmem>>, vector<1x8x128xf32>,
    %59 = vector.extract_strided_slice %53 {offsets = [0, 0, 0], sizes = [1, 8, 128], strides = [1, 1, 1]} : vector<2x8x128xf32> to vector<1x8x128xf32>
    %60 = vector.shape_cast %59 : vector<1x8x128xf32> to vector<8x128xf32>
    %c11 = arith.constant 11 : index
    %c0_25 = arith.constant 0 : index
    %c0_26 = arith.constant 0 : index
    %61 = vector.load %arg2[%c11, %c0_25, %c0_26] : memref<26x8x128xf32, #tpu.memory_space<vmem>>, vector<1x8x128xf32>
    %62 = vector.shape_cast %61 : vector<1x8x128xf32> to vector<8x128xf32>
    %63 = vector.shape_cast %60 : vector<8x128xf32> to vector<1x8x128xf32>
    tpu.vector_store %arg2[%c11, %c0_25, %c0_26], %63 {strides = array<i32>} : memref<26x8x128xf32, #tpu.memory_space<vmem>>, vector<1x8x128xf32>,
    %64 = vector.extract_strided_slice %52 {offsets = [1, 0, 0], sizes = [1, 8, 128], strides = [1, 1, 1]} : vector<2x8x128xf32> to vector<1x8x128xf32>
    %65 = vector.shape_cast %64 : vector<1x8x128xf32> to vector<8x128xf32>
    %c12 = arith.constant 12 : index
    %c0_27 = arith.constant 0 : index
    %c0_28 = arith.constant 0 : index
    %66 = vector.load %arg2[%c12, %c0_27, %c0_28] : memref<26x8x128xf32, #tpu.memory_space<vmem>>, vector<1x8x128xf32>
    %67 = vector.shape_cast %66 : vector<1x8x128xf32> to vector<8x128xf32>
    %68 = vector.shape_cast %65 : vector<8x128xf32> to vector<1x8x128xf32>
    tpu.vector_store %arg2[%c12, %c0_27, %c0_28], %68 {strides = array<i32>} : memref<26x8x128xf32, #tpu.memory_space<vmem>>, vector<1x8x128xf32>,
    %69 = vector.extract_strided_slice %53 {offsets = [1, 0, 0], sizes = [1, 8, 128], strides = [1, 1, 1]} : vector<2x8x128xf32> to vector<1x8x128xf32>
    %70 = vector.shape_cast %69 : vector<1x8x128xf32> to vector<8x128xf32>
    %c13 = arith.constant 13 : index
    %c0_29 = arith.constant 0 : index
    %c0_30 = arith.constant 0 : index
    %71 = vector.load %arg2[%c13, %c0_29, %c0_30] : memref<26x8x128xf32, #tpu.memory_space<vmem>>, vector<1x8x128xf32>
    %72 = vector.shape_cast %71 : vector<1x8x128xf32> to vector<8x128xf32>
    %73 = vector.shape_cast %70 : vector<8x128xf32> to vector<1x8x128xf32>
    tpu.vector_store %arg2[%c13, %c0_29, %c0_30], %73 {strides = array<i32>} : memref<26x8x128xf32, #tpu.memory_space<vmem>>, vector<1x8x128xf32>,
    %cst_31 = arith.constant 25.1327419 : f32
    %74 = vector.broadcast %cst_31 : f32 to vector<2x8x128xf32>
    %75 = arith.mulf %0, %74 : vector<2x8x128xf32>
    %76 = math.sin %75 : vector<2x8x128xf32>
    %77 = math.cos %75 : vector<2x8x128xf32>
    %78 = vector.extract_strided_slice %76 {offsets = [0, 0, 0], sizes = [1, 8, 128], strides = [1, 1, 1]} : vector<2x8x128xf32> to vector<1x8x128xf32>
    %79 = vector.shape_cast %78 : vector<1x8x128xf32> to vector<8x128xf32>
    %c14 = arith.constant 14 : index
    %c0_32 = arith.constant 0 : index
    %c0_33 = arith.constant 0 : index
    %80 = vector.load %arg2[%c14, %c0_32, %c0_33] : memref<26x8x128xf32, #tpu.memory_space<vmem>>, vector<1x8x128xf32>
    %81 = vector.shape_cast %80 : vector<1x8x128xf32> to vector<8x128xf32>
    %82 = vector.shape_cast %79 : vector<8x128xf32> to vector<1x8x128xf32>
    tpu.vector_store %arg2[%c14, %c0_32, %c0_33], %82 {strides = array<i32>} : memref<26x8x128xf32, #tpu.memory_space<vmem>>, vector<1x8x128xf32>,
    %83 = vector.extract_strided_slice %77 {offsets = [0, 0, 0], sizes = [1, 8, 128], strides = [1, 1, 1]} : vector<2x8x128xf32> to vector<1x8x128xf32>
    %84 = vector.shape_cast %83 : vector<1x8x128xf32> to vector<8x128xf32>
    %c15 = arith.constant 15 : index
    %c0_34 = arith.constant 0 : index
    %c0_35 = arith.constant 0 : index
    %85 = vector.load %arg2[%c15, %c0_34, %c0_35] : memref<26x8x128xf32, #tpu.memory_space<vmem>>, vector<1x8x128xf32>
    %86 = vector.shape_cast %85 : vector<1x8x128xf32> to vector<8x128xf32>
    %87 = vector.shape_cast %84 : vector<8x128xf32> to vector<1x8x128xf32>
    tpu.vector_store %arg2[%c15, %c0_34, %c0_35], %87 {strides = array<i32>} : memref<26x8x128xf32, #tpu.memory_space<vmem>>, vector<1x8x128xf32>,
    %88 = vector.extract_strided_slice %76 {offsets = [1, 0, 0], sizes = [1, 8, 128], strides = [1, 1, 1]} : vector<2x8x128xf32> to vector<1x8x128xf32>
    %89 = vector.shape_cast %88 : vector<1x8x128xf32> to vector<8x128xf32>
    %c16 = arith.constant 16 : index
    %c0_36 = arith.constant 0 : index
    %c0_37 = arith.constant 0 : index
    %90 = vector.load %arg2[%c16, %c0_36, %c0_37] : memref<26x8x128xf32, #tpu.memory_space<vmem>>, vector<1x8x128xf32>
    %91 = vector.shape_cast %90 : vector<1x8x128xf32> to vector<8x128xf32>
    %92 = vector.shape_cast %89 : vector<8x128xf32> to vector<1x8x128xf32>
    tpu.vector_store %arg2[%c16, %c0_36, %c0_37], %92 {strides = array<i32>} : memref<26x8x128xf32, #tpu.memory_space<vmem>>, vector<1x8x128xf32>,
    %93 = vector.extract_strided_slice %77 {offsets = [1, 0, 0], sizes = [1, 8, 128], strides = [1, 1, 1]} : vector<2x8x128xf32> to vector<1x8x128xf32>
    %94 = vector.shape_cast %93 : vector<1x8x128xf32> to vector<8x128xf32>
    %c17 = arith.constant 17 : index
    %c0_38 = arith.constant 0 : index
    %c0_39 = arith.constant 0 : index
    %95 = vector.load %arg2[%c17, %c0_38, %c0_39] : memref<26x8x128xf32, #tpu.memory_space<vmem>>, vector<1x8x128xf32>
    %96 = vector.shape_cast %95 : vector<1x8x128xf32> to vector<8x128xf32>
    %97 = vector.shape_cast %94 : vector<8x128xf32> to vector<1x8x128xf32>
    tpu.vector_store %arg2[%c17, %c0_38, %c0_39], %97 {strides = array<i32>} : memref<26x8x128xf32, #tpu.memory_space<vmem>>, vector<1x8x128xf32>,
    %cst_40 = arith.constant 50.2654839 : f32
    %98 = vector.broadcast %cst_40 : f32 to vector<2x8x128xf32>
    %99 = arith.mulf %0, %98 : vector<2x8x128xf32>
    %100 = math.sin %99 : vector<2x8x128xf32>
    %101 = math.cos %99 : vector<2x8x128xf32>
    %102 = vector.extract_strided_slice %100 {offsets = [0, 0, 0], sizes = [1, 8, 128], strides = [1, 1, 1]} : vector<2x8x128xf32> to vector<1x8x128xf32>
    %103 = vector.shape_cast %102 : vector<1x8x128xf32> to vector<8x128xf32>
    %c18 = arith.constant 18 : index
    %c0_41 = arith.constant 0 : index
    %c0_42 = arith.constant 0 : index
    %104 = vector.load %arg2[%c18, %c0_41, %c0_42] : memref<26x8x128xf32, #tpu.memory_space<vmem>>, vector<1x8x128xf32>
    %105 = vector.shape_cast %104 : vector<1x8x128xf32> to vector<8x128xf32>
    %106 = vector.shape_cast %103 : vector<8x128xf32> to vector<1x8x128xf32>
    tpu.vector_store %arg2[%c18, %c0_41, %c0_42], %106 {strides = array<i32>} : memref<26x8x128xf32, #tpu.memory_space<vmem>>, vector<1x8x128xf32>,
    %107 = vector.extract_strided_slice %101 {offsets = [0, 0, 0], sizes = [1, 8, 128], strides = [1, 1, 1]} : vector<2x8x128xf32> to vector<1x8x128xf32>
    %108 = vector.shape_cast %107 : vector<1x8x128xf32> to vector<8x128xf32>
    %c19 = arith.constant 19 : index
    %c0_43 = arith.constant 0 : index
    %c0_44 = arith.constant 0 : index
    %109 = vector.load %arg2[%c19, %c0_43, %c0_44] : memref<26x8x128xf32, #tpu.memory_space<vmem>>, vector<1x8x128xf32>
    %110 = vector.shape_cast %109 : vector<1x8x128xf32> to vector<8x128xf32>
    %111 = vector.shape_cast %108 : vector<8x128xf32> to vector<1x8x128xf32>
    tpu.vector_store %arg2[%c19, %c0_43, %c0_44], %111 {strides = array<i32>} : memref<26x8x128xf32, #tpu.memory_space<vmem>>, vector<1x8x128xf32>,
    %112 = vector.extract_strided_slice %100 {offsets = [1, 0, 0], sizes = [1, 8, 128], strides = [1, 1, 1]} : vector<2x8x128xf32> to vector<1x8x128xf32>
    %113 = vector.shape_cast %112 : vector<1x8x128xf32> to vector<8x128xf32>
    %c20 = arith.constant 20 : index
    %c0_45 = arith.constant 0 : index
    %c0_46 = arith.constant 0 : index
    %114 = vector.load %arg2[%c20, %c0_45, %c0_46] : memref<26x8x128xf32, #tpu.memory_space<vmem>>, vector<1x8x128xf32>
    %115 = vector.shape_cast %114 : vector<1x8x128xf32> to vector<8x128xf32>
    %116 = vector.shape_cast %113 : vector<8x128xf32> to vector<1x8x128xf32>
    tpu.vector_store %arg2[%c20, %c0_45, %c0_46], %116 {strides = array<i32>} : memref<26x8x128xf32, #tpu.memory_space<vmem>>, vector<1x8x128xf32>,
    %117 = vector.extract_strided_slice %101 {offsets = [1, 0, 0], sizes = [1, 8, 128], strides = [1, 1, 1]} : vector<2x8x128xf32> to vector<1x8x128xf32>
    %118 = vector.shape_cast %117 : vector<1x8x128xf32> to vector<8x128xf32>
    %c21 = arith.constant 21 : index
    %c0_47 = arith.constant 0 : index
    %c0_48 = arith.constant 0 : index
    %119 = vector.load %arg2[%c21, %c0_47, %c0_48] : memref<26x8x128xf32, #tpu.memory_space<vmem>>, vector<1x8x128xf32>
    %120 = vector.shape_cast %119 : vector<1x8x128xf32> to vector<8x128xf32>
    %121 = vector.shape_cast %118 : vector<8x128xf32> to vector<1x8x128xf32>
    tpu.vector_store %arg2[%c21, %c0_47, %c0_48], %121 {strides = array<i32>} : memref<26x8x128xf32, #tpu.memory_space<vmem>>, vector<1x8x128xf32>,
    %cst_49 = arith.constant 100.530968 : f32
    %122 = vector.broadcast %cst_49 : f32 to vector<2x8x128xf32>
    %123 = arith.mulf %0, %122 : vector<2x8x128xf32>
    %124 = math.sin %123 : vector<2x8x128xf32>
    %125 = math.cos %123 : vector<2x8x128xf32>
    %126 = vector.extract_strided_slice %124 {offsets = [0, 0, 0], sizes = [1, 8, 128], strides = [1, 1, 1]} : vector<2x8x128xf32> to vector<1x8x128xf32>
    %127 = vector.shape_cast %126 : vector<1x8x128xf32> to vector<8x128xf32>
    %c22 = arith.constant 22 : index
    %c0_50 = arith.constant 0 : index
    %c0_51 = arith.constant 0 : index
    %128 = vector.load %arg2[%c22, %c0_50, %c0_51] : memref<26x8x128xf32, #tpu.memory_space<vmem>>, vector<1x8x128xf32>
    %129 = vector.shape_cast %128 : vector<1x8x128xf32> to vector<8x128xf32>
    %130 = vector.shape_cast %127 : vector<8x128xf32> to vector<1x8x128xf32>
    tpu.vector_store %arg2[%c22, %c0_50, %c0_51], %130 {strides = array<i32>} : memref<26x8x128xf32, #tpu.memory_space<vmem>>, vector<1x8x128xf32>,
    %131 = vector.extract_strided_slice %125 {offsets = [0, 0, 0], sizes = [1, 8, 128], strides = [1, 1, 1]} : vector<2x8x128xf32> to vector<1x8x128xf32>
    %132 = vector.shape_cast %131 : vector<1x8x128xf32> to vector<8x128xf32>
    %c23 = arith.constant 23 : index
    %c0_52 = arith.constant 0 : index
    %c0_53 = arith.constant 0 : index
    %133 = vector.load %arg2[%c23, %c0_52, %c0_53] : memref<26x8x128xf32, #tpu.memory_space<vmem>>, vector<1x8x128xf32>
    %134 = vector.shape_cast %133 : vector<1x8x128xf32> to vector<8x128xf32>
    %135 = vector.shape_cast %132 : vector<8x128xf32> to vector<1x8x128xf32>
    tpu.vector_store %arg2[%c23, %c0_52, %c0_53], %135 {strides = array<i32>} : memref<26x8x128xf32, #tpu.memory_space<vmem>>, vector<1x8x128xf32>,
    %136 = vector.extract_strided_slice %124 {offsets = [1, 0, 0], sizes = [1, 8, 128], strides = [1, 1, 1]} : vector<2x8x128xf32> to vector<1x8x128xf32>
    %137 = vector.shape_cast %136 : vector<1x8x128xf32> to vector<8x128xf32>
    %c24 = arith.constant 24 : index
    %c0_54 = arith.constant 0 : index
    %c0_55 = arith.constant 0 : index
    %138 = vector.load %arg2[%c24, %c0_54, %c0_55] : memref<26x8x128xf32, #tpu.memory_space<vmem>>, vector<1x8x128xf32>
    %139 = vector.shape_cast %138 : vector<1x8x128xf32> to vector<8x128xf32>
    %140 = vector.shape_cast %137 : vector<8x128xf32> to vector<1x8x128xf32>
    tpu.vector_store %arg2[%c24, %c0_54, %c0_55], %140 {strides = array<i32>} : memref<26x8x128xf32, #tpu.memory_space<vmem>>, vector<1x8x128xf32>,
    %141 = vector.extract_strided_slice %125 {offsets = [1, 0, 0], sizes = [1, 8, 128], strides = [1, 1, 1]} : vector<2x8x128xf32> to vector<1x8x128xf32>
    %142 = vector.shape_cast %141 : vector<1x8x128xf32> to vector<8x128xf32>
    %c25 = arith.constant 25 : index
    %c0_56 = arith.constant 0 : index
    %c0_57 = arith.constant 0 : index
    %143 = vector.load %arg2[%c25, %c0_56, %c0_57] : memref<26x8x128xf32, #tpu.memory_space<vmem>>, vector<1x8x128xf32>
    %144 = vector.shape_cast %143 : vector<1x8x128xf32> to vector<8x128xf32>
    %145 = vector.shape_cast %142 : vector<8x128xf32> to vector<1x8x128xf32>
    tpu.vector_store %arg2[%c25, %c0_56, %c0_57], %145 {strides = array<i32>} : memref<26x8x128xf32, #tpu.memory_space<vmem>>, vector<1x8x128xf32>,
    return
  }
  func.func @transform_0(%arg0: i32) -> (i32, i32, i32) {
    %c0_i32 = arith.constant 0 : i32
    %c0_i32_0 = arith.constant 0 : i32
    %c0_i32_1 = arith.constant 0 : i32
    return %c0_i32, %arg0, %c0_i32_0 : i32, i32, i32
  }
  func.func @transform_1(%arg0: i32) -> (i32, i32, i32) {
    %c0_i32 = arith.constant 0 : i32
    %c0_i32_0 = arith.constant 0 : i32
    %c0_i32_1 = arith.constant 0 : i32
    return %c0_i32, %arg0, %c0_i32_0 : i32, i32, i32
  }
}

</mosaic_0001>

<bundles_post_ra>
// kernel: tpu_custom_call.1
= control target key start
LH: loop header
LB: loop body
LE: loop exit
PB: predicated region body
PF: predicated region fallthrough
CT: control target
= control target key end

     0   :  { %6 = vsyncpa [#allocation3], 0  ;;  %s3938_s0 = inlined_call_operand.hbm [shape: f32[2,8,128], index: 0, kind: input, shape index: {}]   ;;  %s3939_s1 = inlined_call_operand.hbm [shape: f32[26,8,128], index: 1, kind: output, shape index: {}]  }
   0x1   :  { %7 = vsyncpa [#allocation4], 0  ;;  %s2837_s6 = smov [#allocation2]  }
   0x2   :  { %s13_s7 = sshll.u32 %s2837_s6, 4  ;;  %s14_s7 = int_to_ptr.vmem [resolvable:$true] %s13_s7 }
   0x3   :  { %s2801_s8 = scalar_lea.vmem %s14_s7, 256  ;;  %p2806_p1 = scmp.lt.s32.totalorder %s14_s7, %s14_s7 }
   0x4   :  { %p2802_p0 = scmp.ne.s32.totalorder %s14_s7, %s2801_s8  ;;  %p2807_p2 = scmp.lt.s32.totalorder %s2801_s8, %s2801_s8 }
   0x6   :  { %p2808_p3 = por %p2807_p2, %p2806_p1 }
   0x8   :  { %p2809_p4 = pnand %p2808_p3, %p2802_p0 }
   0xa   :  { %2812 = shalt.err (!%p2809_p4)
}
   0xb   :  { %s2838_s9 = smov 128   ;;  %s2839_s10 = smov 8  }
   0xc   :  { %19 = dma.hbm_to_vmem [thread:$0]  %s3938_s0, 256, %s14_s7, [#allocation3], %s2838_s9, %s2838_s9, %s2839_s10  }
   0xd   :  { %2833 = dma.done.wait [#allocation3], 256  }
   0xe   :  { %2834 = vsyncadd [#allocation3], 4294967040  ;;  %v2863_v0 = vld [vmem:[#allocation2] sm:$0xff]  ;;  %v2865_v1 = vld [vmem:[#allocation2 + $0x8] sm:$0xff]  ;;  %v2840_v32 = vmov 683565275  }
   0xf   :  { %25 = vst [vmem:[#allocation5] sm:$0xff] %v2863_v0  ;;  %26 = vst [vmem:[#allocation5 + $0x8] sm:$0xff] %v2865_v1  ;;  %v2870_v2 = vmul.f32 3.1415927, %v2863_v0  ;;  %v2873_v3 = vmul.f32 3.1415927, %v2865_v1 }
  0x10   :  { %v2876_v4 = vmul.f32 6.2831855, %v2863_v0  ;;  %v2888_v26 = vmul.f32 6.2831855, %v2865_v1  ;;  %v2841_v34 = vmov 2475754826  }
  0x11   :  { %v29_v5 = vand.u32 2147483647, %v2870_v2  ;;  %v32_v6 = vand.u32 2139095040, %v2870_v2  ;;  %v133_v7 = vand.u32 2147483647, %v2873_v3  ;;  %v136_v8 = vand.u32 2139095040, %v2873_v3 }
  0x12   :  { %v456_v13 = vand.u32 2139095040, %v2876_v4  ;;  %v2842_v36 = vmov 2131351028   ;;  %v2843_v38 = vmov 2102212464   ;;  %vm31_vm13 = vcmp.lt.s32.totalorder %v2870_v2, 0 }
  0x13   :  { %v33_v9 = vshrl.u32 %v32_v6, 23  ;;  %v36_v10 = vand.u32 8388607, %v29_v5  ;;  %v137_v11 = vshrl.u32 %v136_v8, 23  ;;  %v140_v12 = vand.u32 8388607, %v133_v7 }
  0x14   :  { %v457_v16 = vshrl.u32 %v456_v13, 23  ;;  %v2844_v40 = vmov 920167782   ;;  %v2845_v48 = vmov 1326507024   ;;  %s2846_s0 = smov [#allocation5]  }
  0x15   :  { %v2588_v14 = vadd.s32 4294967169, %v33_v9  ;;  %v2592_v15 = vadd.s32 4294967169, %v137_v11  ;;  %v37_v18 = vor.u32 8388608, %v36_v10  ;;  %v141_v19 = vor.u32 8388608, %v140_v12  ;;  %s2576_s13 = sshll.u32 %s2846_s0, 4  ;;  %s2577_s13 = int_to_ptr.vmem [resolvable:$true] %s2576_s13 }
  0x16   :  { %v2604_v21 = vadd.s32 4294967169, %v457_v16  ;;  %vm2996_vm14 = vcmp.le.f32.partialorder %v29_v5, 0.7853982  ;;  %s2813_s14 = scalar_lea.vmem %s2577_s13, 3328  ;;  %p2818_p6 = scmp.lt.s32.totalorder %s2577_s13, %s2577_s13 }
  0x17   :  { %v39_v17 = vadd.s32 1, %v2588_v14  ;;  %v143_v20 = vadd.s32 1, %v2592_v15  ;;  %v2890_v27 = vshll.u32 %v37_v18, 8  ;;  %v2892_v29 = vshll.u32 %v141_v19, 8  ;;  %p2814_p5 = scmp.ne.s32.totalorder %s2577_s13, %s2813_s14  ;;  %p2819_p7 = scmp.lt.s32.totalorder %s2813_s14, %s2813_s14 }
  0x18   :  { %v2894_v30 = vadd.s32 1, %v2604_v21 }
  0x19   :  { %vm40_vm0 = vcmp.gt.s32.totalorder %v39_v17, 0  ;;  %vm144_vm1 = vcmp.gt.s32.totalorder %v143_v20, 0  ;;  %p2820_p8 = por %p2819_p7, %p2818_p6 }
  0x1a   :  { %v41_v22 = vsel %vm40_vm0, %v39_v17, 0  ;;  %v145_v25 = vsel %vm144_vm1, %v143_v20, 0  ;;  %vm464_vm6 = vcmp.gt.s32.totalorder %v2894_v30, 0 }
  0x1b   :  { %v42_v23 = vshrl.u32 %v41_v22, 5  ;;  %v43_v24 = vand.u32 31, %v41_v22  ;;  %v147_v28 = vand.u32 31, %v145_v25  ;;  %v2901_v42 = vshrl.u32 %v145_v25, 5  ;;  %p2821_p9 = pnand %p2820_p8, %p2814_p5 }
  0x1d   :  { %v44_v31 = vsub.s32 32, %v43_v24  ;;  %v46_v33 = vshll.u32 %v2840_v32, %v43_v24  ;;  %v49_v35 = vshll.u32 %v2841_v34, %v43_v24  ;;  %v52_v37 = vshll.u32 %v2842_v36, %v43_v24 }
  0x1e   :  { %v55_v39 = vshll.u32 %v2843_v38, %v43_v24  ;;  %v58_v41 = vshll.u32 %v2844_v40, %v43_v24  ;;  %vm61_vm2 = vcmp.lt.s32.totalorder %v42_v23, 1  ;;  %vm62_vm3 = vcmp.lt.s32.totalorder %v42_v23, 2 }
  0x1f   :  { %v45_v43 = vshrl.u32 %v2840_v32, %v44_v31  ;;  %v47_v44 = vshrl.u32 %v2841_v34, %v44_v31  ;;  %v50_v45 = vshrl.u32 %v2842_v36, %v44_v31  ;;  %v53_v46 = vshrl.u32 %v2843_v38, %v44_v31 }
  0x20   :  { %v56_v47 = vshrl.u32 %v2844_v40, %v44_v31  ;;  %v59_v49 = vshrl.u32 %v2845_v48, %v44_v31  ;;  %vm64_vm4 = vcmp.lt.s32.totalorder %v42_v23, 4  ;;  %v148_v53 = vsub.s32 32, %v147_v28 }
  0x21   :  { %v48_v50 = vor.u32 %v47_v44, %v46_v33  ;;  %v51_v51 = vor.u32 %v50_v45, %v49_v35  ;;  %v54_v52 = vor.u32 %v53_v46, %v52_v37  ;;  %vm63_vm5 = vcmp.lt.s32.totalorder %v42_v23, 3 }
  0x22   :  { %v57_v54 = vor.u32 %v56_v47, %v55_v39  ;;  %v60_v55 = vor.u32 %v59_v49, %v58_v41  ;;  %v150_v56 = vshll.u32 %v2840_v32, %v147_v28  ;;  %v153_v6 = vshll.u32 %v2841_v34, %v147_v28 }
  0x23   :  { %v65_v57 = vsel %vm61_vm2, %v45_v43, %v48_v50  ;;  %v66_v58 = vsel %vm64_vm4, %v54_v52, 2102212464  ;;  %v69_v59 = vsel %vm61_vm2, %v48_v50, %v51_v51  ;;  %v73_v60 = vsel %vm61_vm2, %v51_v51, %v54_v52 }
  0x24   :  { %v67_v61 = vsel %vm63_vm5, %v51_v51, %v66_v58  ;;  %v70_v62 = vsel %vm64_vm4, %v57_v54, 920167782  ;;  %v74_v63 = vsel %vm64_vm4, %v60_v55, 1326507024  ;;  %v149_v10 = vshrl.u32 %v2840_v32, %v148_v53 }
  0x25   :  { %v71_v8 = vsel %vm63_vm5, %v54_v52, %v70_v62  ;;  %v75_v9 = vsel %vm63_vm5, %v57_v54, %v74_v63  ;;  %v151_v11 = vshrl.u32 %v2841_v34, %v148_v53  ;;  %v68_v12 = vsel %vm62_vm3, %v65_v57, %v67_v61 }
  0x26   :  { %v72_v13 = vsel %vm62_vm3, %v69_v59, %v71_v8  ;;  %v76_v14 = vsel %vm62_vm3, %v73_v60, %v75_v9  ;;  %v154_v15 = vshrl.u32 %v2842_v36, %v148_v53  ;;  %v156_v22 = vshll.u32 %v2842_v36, %v147_v28 }
  0x27   :  { %v2922_v16 = vmul.u32.u64.low %v2890_v27, %v76_v14  ;;  %v2923_v17 = vmul.u32.u64.high %v2890_v27, %v76_v14, %v2922_v16  ;;  %v2926_v18 = vmul.u32.u64.low %v2890_v27, %v72_v13  ;;  %v2927_v19 = vmul.u32.u64.high %v2890_v27, %v72_v13, %v2926_v18 }
  0x28   :  { %v152_v20 = vor.u32 %v151_v11, %v150_v56  ;;  %v155_v21 = vor.u32 %v154_v15, %v153_v6  ;;  %v157_v24 = vshrl.u32 %v2843_v38, %v148_v53  ;;  %v159_v23 = vshll.u32 %v2843_v38, %v147_v28 }
  0x29   :  { %v160_v25 = vshrl.u32 %v2844_v40, %v148_v53  ;;  %v162_v31 = vshll.u32 %v2844_v40, %v147_v28  ;;  %v163_v33 = vshrl.u32 %v2845_v48, %v148_v53  ;;  %v84_v35 = vmul.u32 %v2890_v27, %v68_v12 }
  0x2a   :  { %v158_v37 = vor.u32 %v157_v24, %v156_v22  ;;  %vm165_vm7 = vcmp.lt.s32.totalorder %v2901_v42, 1  ;;  %vm166_vm8 = vcmp.lt.s32.totalorder %v2901_v42, 2  ;;  %vm86_vm9 = vc.u32 %v2923_v17, %v2926_v18 }
  0x2b   :  { %v87_v39 = vadd.s32 1, %v2927_v19  ;;  %v161_v41 = vor.u32 %v160_v25, %v159_v23  ;;  %vm167_vm10 = vcmp.lt.s32.totalorder %v2901_v42, 3  ;;  %v164_v43 = vor.u32 %v163_v33, %v162_v31 }
  0x2c   :  { %vm168_vm11 = vcmp.lt.s32.totalorder %v2901_v42, 4  ;;  %v169_v28 = vsel %vm165_vm7, %v149_v10, %v152_v20  ;;  %v173_v44 = vsel %vm165_vm7, %v152_v20, %v155_v21  ;;  %v177_v47 = vsel %vm165_vm7, %v155_v21, %v158_v37 }
  0x2d   :  { %v88_v27 = vsel %vm86_vm9, %v87_v39, %v2927_v19  ;;  %v170_v45 = vsel %vm168_vm11, %v158_v37, 2102212464  ;;  %v174_v46 = vsel %vm168_vm11, %v161_v41, 920167782  ;;  %v178_v52 = vsel %vm168_vm11, %v164_v43, 1326507024 }
  0x2e   :  { %v89_v49 = vadd.s32 %v88_v27, %v84_v35  ;;  %v171_v50 = vsel %vm167_vm10, %v155_v21, %v170_v45  ;;  %v175_v51 = vsel %vm167_vm10, %v158_v37, %v174_v46  ;;  %v179_v55 = vsel %vm167_vm10, %v161_v41, %v178_v52 }
  0x2f   :  { %v172_v53 = vsel %vm166_vm8, %v169_v28, %v171_v50  ;;  %v176_v54 = vsel %vm166_vm8, %v173_v44, %v175_v51  ;;  %v465_v56 = vsel %vm464_vm6, %v2894_v30, 0  ;;  %v180_v58 = vsel %vm166_vm8, %v177_v47, %v179_v55 }
  0x30   :  { %v90_v57 = vadd.s32 536870912, %v89_v49  ;;  %v2955_v59 = vmul.u32.u64.low %v2892_v29, %v176_v54  ;;  %v2956_v60 = vmul.u32.u64.high %v2892_v29, %v176_v54, %v2955_v59  ;;  %v453_v63 = vand.u32 2147483647, %v2876_v4 }
  0x31   :  { %v2960_v61 = vmul.u32.u64.low %v2892_v29, %v180_v58  ;;  %v2961_v62 = vmul.u32.u64.high %v2892_v29, %v180_v58, %v2960_v61  ;;  %v467_v8 = vand.u32 31, %v465_v56  ;;  %v188_v9 = vmul.u32 %v2892_v29, %v172_v53 }
  0x32   :  { %v91_v6 = vshrl.u32 %v90_v57, 30  ;;  %v560_v30 = vand.u32 2139095040, %v2888_v26  ;;  %v191_v42 = vadd.s32 1, %v2956_v60  ;;  %v460_v11 = vand.u32 8388607, %v453_v63 }
  0x33   :  { %vm190_vm12 = vc.u32 %v2961_v62, %v2955_v59  ;;  %v468_v14 = vsub.s32 32, %v467_v8  ;;  %v2976_v19 = vmul.f32 12.566371, %v2863_v0  ;;  %v2979_v20 = vmul.f32 12.566371, %v2865_v1 }
  0x34   :  { %v92_v10 = vshll.u32 %v91_v6, 30  ;;  %v192_v13 = vsel %vm190_vm12, %v191_v42, %v2956_v60  ;;  %v561_v16 = vshrl.u32 %v560_v30, 23  ;;  %v461_v22 = vor.u32 8388608, %v460_v11 }
  0x35   :  { %v193_v15 = vadd.s32 %v192_v13, %v188_v9  ;;  %v2982_v24 = vshrl.u32 %v465_v56, 5  ;;  %v557_v23 = vand.u32 2147483647, %v2888_v26  ;;  %v85_v25 = vadd.s32 %v2926_v18, %v2923_v17 }
  0x36   :  { %v2971_v12 = vsub.s32 %v89_v49, %v92_v10  ;;  %v476_v33 = vshll.u32 %v2842_v36, %v467_v8  ;;  %v477_v0 = vshrl.u32 %v2843_v38, %v468_v14  ;;  %v470_v1 = vshll.u32 %v2840_v32, %v467_v8 }
  0x37   :  { %v194_v21 = vadd.s32 536870912, %v193_v15  ;;  %v471_v37 = vshrl.u32 %v2841_v34, %v468_v14  ;;  %v2608_v39 = vadd.s32 4294967169, %v561_v16  ;;  %v473_v18 = vshll.u32 %v2841_v34, %v467_v8 }
  0x38   :  { %v95_v29 = vsub.s32 0, %v2971_v12  ;;  %v474_v43 = vshrl.u32 %v2842_v36, %v468_v14  ;;  %v479_v28 = vshll.u32 %v2843_v38, %v467_v8  ;;  %v480_v27 = vshrl.u32 %v2844_v40, %v468_v14 }
  0x39   :  { %v2990_v35 = vshrl.u32 %v194_v21, 30  ;;  %vm485_vm15 = vcmp.lt.s32.totalorder %v2982_v24, 1  ;;  %vm488_vm0 = vcmp.lt.s32.totalorder %v2982_v24, 4  ;;  %v115_v5 = vsub.s32 4, %v91_v6 }
  0x3a   :  { %v2589_v31 = vmin.u32 %v95_v29, %v2971_v12  ;;  %v469_v46 = vshrl.u32 %v2840_v32, %v468_v14  ;;  %v478_v47 = vor.u32 %v477_v0, %v476_v33  ;;  %v472_v50 = vor.u32 %v471_v37, %v470_v1 }
  0x3b   :  { %v196_v44 = vshll.u32 %v2990_v35, 30  ;;  %v482_v51 = vshll.u32 %v2844_v40, %v467_v8  ;;  %v483_v52 = vshrl.u32 %v2845_v48, %v468_v14  ;;  %v475_v53 = vor.u32 %v474_v43, %v473_v18 }
  0x3c   :  { %v97_v17 = vclz %v2589_v31  ;;  %v481_v54 = vor.u32 %v480_v27, %v479_v28  ;;  %v490_v55 = vsel %vm488_vm0, %v478_v47, 2102212464  ;;  %vm486_vm2 = vcmp.lt.s32.totalorder %v2982_v24, 2 }
  0x3d   :  { %v3008_v49 = vsub.s32 %v193_v15, %v196_v44  ;;  %vm487_vm3 = vcmp.lt.s32.totalorder %v2982_v24, 3  ;;  %v116_v8 = vsel %vm31_vm13, %v115_v5, %v91_v6  ;;  %v484_v30 = vor.u32 %v483_v52, %v482_v51 }
  0x3e   :  { %v2590_v45 = vadd.s32 4294967294, %v97_v17  ;;  %v489_v10 = vsel %vm485_vm15, %v469_v46, %v472_v50  ;;  %v491_v42 = vsel %vm487_vm3, %v475_v53, %v490_v55  ;;  %v493_v14 = vsel %vm485_vm15, %v472_v50, %v475_v53 }
  0x3f   :  { %v199_v57 = vsub.s32 0, %v3008_v49  ;;  %v118_v6 = vsel %vm2996_vm14, 0, %v116_v8  ;;  %v189_v15 = vadd.s32 %v2955_v59, %v2961_v62  ;;  %v501_v29 = vshll.u32 %v461_v22, 8 }
  0x40   :  { %vm2591_vm1 = vcmp.lt.s32.totalorder %v2590_v45, 0  ;;  %v497_v33 = vsel %vm485_vm15, %v475_v53, %v478_v47  ;;  %v492_v1 = vsel %vm486_vm2, %v489_v10, %v491_v42  ;;  %v498_v59 = vsel %vm488_vm0, %v484_v30, 1326507024 }
  0x41   :  { %v100_v56 = vsel %vm2591_vm1, 0, %v2590_v45  ;;  %v2593_v9 = vmin.u32 %v199_v57, %v3008_v49  ;;  %v499_v17 = vsel %vm487_vm3, %v481_v54, %v498_v59  ;;  %v567_v18 = vadd.s32 1, %v2608_v39 }
  0x42   :  { %v101_v58 = vsub.s32 32, %v100_v56  ;;  %v102_v60 = vshll.u32 %v2971_v12, %v100_v56  ;;  %v105_v61 = vsub.s32 4294967266, %v100_v56  ;;  %v494_v12 = vsel %vm488_vm0, %v481_v54, 920167782 }
  0x43   :  { %v201_v16 = vclz %v2593_v9  ;;  %v500_v43 = vsel %vm486_vm2, %v497_v33, %v499_v17  ;;  %vm568_vm5 = vcmp.gt.s32.totalorder %v567_v18, 0  ;;  %vm135_vm6 = vcmp.lt.s32.totalorder %v2873_v3, 0 }
  0x44   :  { %v103_v11 = vshrl.u32 %v85_v25, %v101_v58  ;;  %v106_v13 = vadd.s32 127, %v105_v61  ;;  %v495_v25 = vsel %vm487_vm3, %v478_v47, %v494_v12  ;;  %v508_v39 = vmul.u32 %v501_v29, %v492_v1 }
  0x45   :  { %v2594_v0 = vadd.s32 4294967294, %v201_v16  ;;  %v496_v37 = vsel %vm486_vm2, %v493_v14, %v495_v25  ;;  %v3051_v5 = vmul.u32.u64.low %v501_v29, %v500_v43  ;;  %v3052_v46 = vmul.u32.u64.high %v501_v29, %v500_v43, %v3051_v5 }
  0x46   :  { %v104_v21 = vor.u32 %v103_v11, %v102_v60  ;;  %v107_v31 = vshll.u32 %v106_v13, 23  ;;  %v3047_v28 = vmul.u32.u64.low %v501_v29, %v496_v37  ;;  %v3048_v44 = vmul.u32.u64.high %v501_v29, %v496_v37, %v3047_v28 }
  0x47   :  { %vm2595_vm4 = vcmp.lt.s32.totalorder %v2594_v0, 0  ;;  %v569_v24 = vsel %vm568_vm5, %v567_v18, 0  ;;  %v122_v53 = vadd.s32 3, %v118_v6  ;;  %vm3058_vm7 = vcmp.le.f32.partialorder %v133_v7, 0.7853982 }
  0x48   :  { %v108_v62 = vor.u32 4788187, %v107_v31  ;;  %v111_v22 = vcvt.s32.f32 %v104_v21  ;;  %v204_v45 = vsel %vm2595_vm4, 0, %v2594_v0  ;;  %v511_v57 = vadd.s32 1, %v3048_v44 }
  0x49   :  { %v205_v47 = vsub.s32 32, %v204_v45  ;;  %v206_v50 = vshll.u32 %v3008_v49, %v204_v45  ;;  %v209_v51 = vsub.s32 4294967266, %v204_v45  ;;  %v219_v49 = vsub.s32 4, %v2990_v35 }
  0x4a   :  { %v109_v27 = vand.u32 2147483647, %v108_v62  ;;  %vm510_vm8 = vc.u32 %v3052_v46, %v3047_v28  ;;  %v571_v60 = vand.u32 31, %v569_v24  ;;  %v564_v7 = vand.u32 8388607, %v557_v23 }
  0x4b   :  { %v207_v55 = vshrl.u32 %v189_v15, %v205_v47  ;;  %v210_v56 = vadd.s32 127, %v209_v51  ;;  %v512_v9 = vsel %vm510_vm8, %v511_v57, %v3048_v44  ;;  %v3071_v10 = vand.u32 3, %v118_v6 }
  0x4c   :  { %v112_v52 = vmul.f32 %v111_v22, %v109_v27  ;;  %v513_v42 = vadd.s32 %v512_v9, %v508_v39  ;;  %v572_v11 = vsub.s32 32, %v571_v60  ;;  %v3076_v14 = vand.u32 3, %v122_v53 }
  0x4d   :  { %v208_v61 = vor.u32 %v207_v55, %v206_v50  ;;  %v211_v8 = vshll.u32 %v210_v56, 23  ;;  %v220_v16 = vsel %vm135_vm6, %v219_v49, %v2990_v35  ;;  %v3081_v21 = vshrl.u32 %v569_v24, 5 }
  0x4e   :  { %v113_v58 = vxor.u32 2147483648, %v112_v52  ;;  %v514_v29 = vadd.s32 536870912, %v513_v42  ;;  %v574_v31 = vshll.u32 %v2840_v32, %v571_v60  ;;  %v577_v25 = vshll.u32 %v2841_v34, %v571_v60 }
  0x4f   :  { %v212_v12 = vor.u32 4788187, %v211_v8  ;;  %v215_v15 = vcvt.s32.f32 %v208_v61  ;;  %v575_v33 = vshrl.u32 %v2841_v34, %v572_v11  ;;  %v578_v0 = vshrl.u32 %v2842_v36, %v572_v11 }
  0x50   :  { %v114_v30 = vsel %vm31_vm13, %v113_v58, %v112_v52  ;;  %v515_v41 = vshrl.u32 %v514_v29, 30  ;;  %v583_v1 = vshll.u32 %v2843_v38, %v571_v60  ;;  %v580_v59 = vshll.u32 %v2842_v36, %v571_v60 }
  0x51   :  { %v117_v13 = vsel %vm2996_vm14, %v2870_v2, %v114_v30  ;;  %v213_v6 = vand.u32 2147483647, %v212_v12  ;;  %v581_v35 = vshrl.u32 %v2843_v38, %v572_v11  ;;  %v584_v62 = vshrl.u32 %v2844_v40, %v572_v11 }
  0x52   :  { %2742 = vcosq.f32 %v117_v13  ;;  %v222_v22 = vsel %vm3058_vm7, 0, %v220_v16  ;;  %vm455_vm9 = vcmp.lt.s32.totalorder %v2876_v4, 0  ;;  %v516_v17 = vshll.u32 %v515_v41, 30 }
  0x53   :  { %2744 = vsinq.f32 %v117_v13  ;;  %v216_v37 = vmul.f32 %v215_v15, %v213_v6  ;;  %v565_v18 = vor.u32 8388608, %v564_v7  ;;  %vm335_vm10 = vcmp.eq.s32.totalorder %v3071_v10, 2 }
  0x54   :  { %v585_v44 = vor.u32 %v584_v62, %v583_v1  ;;  %v586_v27 = vshll.u32 %v2844_v40, %v571_v60  ;;  %v587_v45 = vshrl.u32 %v2845_v48, %v572_v11  ;;  %vm332_vm11 = vcmp.eq.s32.totalorder %v3071_v10, 0 }
  0x55   :  { %v217_v43 = vxor.u32 2147483648, %v216_v37  ;;  %v3098_v5 = vsub.s32 %v513_v42, %v516_v17  ;;  %v576_v47 = vor.u32 %v575_v33, %v574_v31  ;;  %v579_v50 = vor.u32 %v578_v0, %v577_v25 }
  0x56   :  { %vm592_vm12 = vcmp.lt.s32.totalorder %v3081_v21, 4  ;;  %vm124_vm13 = vcmp.lt.s32.totalorder %v3076_v14, 2  ;;  %vm125_vm14 = vcmp.eq.s32.totalorder %v3076_v14, 0  ;;  %vm331_vm15 = vcmp.lt.s32.totalorder %v3071_v10, 2 }
  0x57   :  { %v218_v51 = vsel %vm135_vm6, %v217_v43, %v216_v37  ;;  %v582_v52 = vor.u32 %v581_v35, %v580_v59  ;;  %vm589_vm0 = vcmp.lt.s32.totalorder %v3081_v21, 1  ;;  %vm121_vm1 = vweird.f32 %v2870_v2 }
  0x58   :  { %v221_v39 = vsel %vm3058_vm7, %v2873_v3, %v218_v51  ;;  %v226_v24 = vadd.s32 3, %v222_v22  ;;  %v519_v53 = vsub.s32 0, %v3098_v5  ;;  %vm591_vm2 = vcmp.lt.s32.totalorder %v3081_v21, 3 }
  0x59   :  { %2746 = vcosq.f32 %v221_v39  ;;  %v539_v55 = vsub.s32 4, %v515_v41  ;;  %v588_v56 = vor.u32 %v587_v45, %v586_v27  ;;  %v598_v57 = vsel %vm592_vm12, %v585_v44, 920167782 }
  0x5a   :  { %2748 = vsinq.f32 %v221_v39  ;;  %v2605_v58 = vmin.u32 %v519_v53, %v3098_v5  ;;  %vm590_vm3 = vcmp.lt.s32.totalorder %v3081_v21, 2  ;;  %v597_v54 = vsel %vm589_vm0, %v576_v47, %v579_v50 }
  0x5b   :  { %v3119_v49 = vand.u32 3, %v222_v22  ;;  %v573_v60 = vshrl.u32 %v2840_v32, %v572_v11  ;;  %v599_v61 = vsel %vm591_vm2, %v582_v52, %v598_v57  ;;  %v3124_v8 = vshll.u32 %v565_v18, 8 }
  0x5c   :  { %vm128_vm4 = vcmp.eq.s32.totalorder %v3076_v14, 2  ;;  %v3127_v9 = vand.u32 3, %v226_v24  ;;  %v509_v7 = vadd.s32 %v3047_v28, %v3052_v46  ;;  %v521_v30 = vclz %v2605_v58 }
  0x5d   :  { %v540_v13 = vsel %vm455_vm9, %v539_v55, %v515_v41  ;;  %v594_v11 = vsel %vm592_vm12, %v582_v52, 2102212464  ;;  %v600_v12 = vsel %vm590_vm3, %v597_v54, %v599_v61  ;;  %v602_v15 = vsel %vm592_vm12, %v588_v56, 1326507024 }
  0x5e   :  { %vm3141_vm5 = vcmp.le.f32.partialorder %v453_v63, 0.7853982  ;;  %v2606_v46 = vadd.s32 4294967294, %v521_v30  ;;  %v601_v6 = vsel %vm589_vm0, %v579_v50, %v582_v52  ;;  %v603_v31 = vsel %vm591_vm2, %v585_v44, %v602_v15 }
  0x5f   :  { %v2743_v42 = vpop.eup %2742  ;;  %vm435_vm6 = vcmp.eq.s32.totalorder %v3119_v49, 0  ;;  %v593_v41 = vsel %vm589_vm0, %v573_v60, %v576_v47  ;;  %v3153_v33 = vmul.u32.u64.low %v3124_v8, %v600_v12  ;;  %v3154_v0 = vmul.u32.u64.high %v3124_v8, %v600_v12, %v3153_v33 }
  0x60   :  { %v2745_v16 = vpop.eup %2744  ;;  %v129_v29 = vxor.u32 2147483648, %v2743_v42  ;;  %vm434_vm7 = vcmp.lt.s32.totalorder %v3119_v49, 2  ;;  %vm2607_vm8 = vcmp.lt.s32.totalorder %v2606_v46, 0  ;;  %v595_v37 = vsel %vm591_vm2, %v579_v50, %v594_v11 }
  0x61   :  { %v126_v25 = vxor.u32 2147483648, %v2745_v16  ;;  %vm225_vm12 = vweird.f32 %v2873_v3  ;;  %v524_v62 = vsel %vm2607_vm8, 0, %v2606_v46  ;;  %v604_v22 = vsel %vm590_vm3, %v601_v6, %v603_v31 }
  0x62   :  { %v130_v63 = vsel %vm128_vm4, %v129_v29, %v2745_v16  ;;  %v337_v1 = vsel %vm335_vm10, %v129_v29, %v2745_v16  ;;  %v525_v43 = vsub.s32 32, %v524_v62  ;;  %v526_v44 = vshll.u32 %v3098_v5, %v524_v62 }
  0x63   :  { %v127_v59 = vsel %vm125_vm14, %v2743_v42, %v126_v25  ;;  %v334_v35 = vsel %vm332_vm11, %v2743_v42, %v126_v25  ;;  %v529_v47 = vsub.s32 4294967266, %v524_v62  ;;  %v596_v50 = vsel %vm590_vm3, %v593_v41, %v595_v37 }
  0x64   :  { %v131_v17 = vsel %vm124_vm13, %v127_v59, %v130_v63  ;;  %v338_v18 = vsel %vm331_vm15, %v334_v35, %v337_v1  ;;  %v527_v14 = vshrl.u32 %v509_v7, %v525_v43  ;;  %v880_v52 = vand.u32 2139095040, %v2976_v19 }
  0x65   :  { %v132_v27 = vsel %vm121_vm1, nan, %v131_v17  ;;  %v339_v45 = vsel %vm121_vm1, nan, %v338_v18  ;;  %v3183_v51 = vmul.u32.u64.low %v3124_v8, %v604_v22  ;;  %v3184_v10 = vmul.u32.u64.high %v3124_v8, %v604_v22, %v3183_v51 }
  0x66   :  { %444 = vst [vmem:[#allocation5 + $0x10] sm:$0xff] %v132_v27  ;;  %446 = vst [vmem:[#allocation5 + $0x18] sm:$0xff] %v339_v45  ;;  %vm228_vm10 = vcmp.lt.s32.totalorder %v3127_v9, 2  ;;  %vm438_vm11 = vcmp.eq.s32.totalorder %v3119_v49, 2  ;;  %v530_v5 = vadd.s32 127, %v529_v47  ;;  %v615_v2 = vadd.s32 1, %v3154_v0  ;;  %v2747_v39 = vpop.eup %2746 }
  0x67   :  { %vm232_vm13 = vcmp.eq.s32.totalorder %v3127_v9, 2  ;;  %v528_v21 = vor.u32 %v527_v14, %v526_v44  ;;  %v612_v24 = vmul.u32 %v3124_v8, %v596_v50  ;;  %v881_v53 = vshrl.u32 %v880_v52, 23  ;;  %v2749_v55 = vpop.eup %2748 }
  0x68   :  { %vm229_vm14 = vcmp.eq.s32.totalorder %v3127_v9, 0  ;;  %v233_v56 = vxor.u32 2147483648, %v2747_v39  ;;  %v531_v57 = vshll.u32 %v530_v5, 23  ;;  %v542_v58 = vsel %vm3141_vm5, 0, %v540_v13 }
  0x69   :  { %v230_v54 = vxor.u32 2147483648, %v2749_v55  ;;  %v535_v60 = vcvt.s32.f32 %v528_v21  ;;  %vm614_vm15 = vc.u32 %v3184_v10, %v3153_v33  ;;  %v877_v61 = vand.u32 2147483647, %v2976_v19 }
  0x6a   :  { %v234_v7 = vsel %vm232_vm13, %v233_v56, %v2749_v55  ;;  %v440_v8 = vsel %vm438_vm11, %v233_v56, %v2749_v55  ;;  %v532_v30 = vor.u32 4788187, %v531_v57  ;;  %v616_v42 = vsel %vm614_vm15, %v615_v2, %v3154_v0 }
  0x6b   :  { %v231_v11 = vsel %vm229_vm14, %v2747_v39, %v230_v54  ;;  %v437_v12 = vsel %vm435_vm6, %v2747_v39, %v230_v54  ;;  %v617_v15 = vadd.s32 %v616_v42, %v612_v24  ;;  %v2620_v13 = vadd.s32 4294967169, %v881_v53 }
  0x6c   :  { %v235_v16 = vsel %vm228_vm10, %v231_v11, %v234_v7  ;;  %v441_v29 = vsel %vm434_vm7, %v437_v12, %v440_v8  ;;  %v533_v46 = vand.u32 2147483647, %v532_v30  ;;  %v984_v6 = vand.u32 2139095040, %v2979_v20 }
  0x6d   :  { %v236_v31 = vsel %vm225_vm12, nan, %v235_v16  ;;  %v442_v25 = vsel %vm225_vm12, nan, %v441_v29  ;;  %v618_v41 = vadd.s32 536870912, %v617_v15  ;;  %v887_v0 = vadd.s32 1, %v2620_v13 }
  0x6e   :  { %448 = vst [vmem:[#allocation5 + $0x20] sm:$0xff] %v236_v31  ;;  %450 = vst [vmem:[#allocation5 + $0x28] sm:$0xff] %v442_v25  ;;  %v536_v63 = vmul.f32 %v535_v60, %v533_v46  ;;  %v546_v1 = vadd.s32 3, %v542_v58  ;;  %v884_v49 = vand.u32 8388607, %v877_v61  ;;  %v985_v35 = vshrl.u32 %v984_v6, 23 }
  0x6f   :  { %v619_v9 = vshrl.u32 %v618_v41, 30  ;;  %vm888_vm0 = vcmp.gt.s32.totalorder %v887_v0, 0  ;;  %v3218_v18 = vand.u32 3, %v542_v58  ;;  %v981_v50 = vand.u32 2147483647, %v2979_v20 }
  0x70   :  { %v537_v37 = vxor.u32 2147483648, %v536_v63  ;;  %v889_v59 = vsel %vm888_vm0, %v887_v0, 0  ;;  %v3216_v17 = vand.u32 3, %v546_v1  ;;  %v885_v27 = vor.u32 8388608, %v884_v49 }
  0x71   :  { %v620_v62 = vshll.u32 %v619_v9, 30  ;;  %v891_v22 = vand.u32 31, %v889_v59  ;;  %v643_v47 = vsub.s32 4, %v619_v9  ;;  %v2624_v14 = vadd.s32 4294967169, %v985_v35 }
  0x72   :  { %v538_v3 = vsel %vm455_vm9, %v537_v37, %v536_v63  ;;  %vm559_vm9 = vcmp.lt.s32.totalorder %v2888_v26, 0  ;;  %v613_v21 = vadd.s32 %v3153_v33, %v3184_v10  ;;  %v890_v53 = vshrl.u32 %v889_v59, 5 }
  0x73   :  { %v541_v43 = vsel %vm3141_vm5, %v2876_v4, %v538_v3  ;;  %v3223_v44 = vsub.s32 %v617_v15, %v620_v62  ;;  %v892_v45 = vsub.s32 32, %v891_v22  ;;  %v894_v52 = vshll.u32 %v2840_v32, %v891_v22 }
  0x74   :  { %2750 = vcosq.f32 %v541_v43  ;;  %v897_v5 = vshll.u32 %v2841_v34, %v891_v22  ;;  %v900_v39 = vshll.u32 %v2842_v36, %v891_v22  ;;  %v3236_v55 = vshll.u32 %v885_v27, 8 }
  0x75   :  { %2752 = vsinq.f32 %v541_v43  ;;  %v623_v51 = vsub.s32 0, %v3223_v44  ;;  %v895_v28 = vshrl.u32 %v2841_v34, %v892_v45  ;;  %v898_v2 = vshrl.u32 %v2842_v36, %v892_v45 }
  0x76   :  { %v893_v56 = vshrl.u32 %v2840_v32, %v892_v45  ;;  %v901_v57 = vshrl.u32 %v2843_v38, %v892_v45  ;;  %v3242_v58 = vand.u32 8388607, %v981_v50  ;;  %v991_v54 = vadd.s32 1, %v2624_v14 }
  0x77   :  { %v2609_v24 = vmin.u32 %v623_v51, %v3223_v44  ;;  %vm552_vm1 = vcmp.eq.s32.totalorder %v3216_v17, 2  ;;  %vm759_vm2 = vcmp.eq.s32.totalorder %v3218_v18, 2  ;;  %v3248_v33 = vsel %vm559_vm9, %v643_v47, %v619_v9 }
  0x78   :  { %v896_v10 = vor.u32 %v895_v28, %v894_v52  ;;  %v899_v7 = vor.u32 %v898_v2, %v897_v5  ;;  %vm549_vm3 = vcmp.eq.s32.totalorder %v3216_v17, 0  ;;  %vm756_vm4 = vcmp.eq.s32.totalorder %v3218_v18, 0 }
  0x79   :  { %v625_v60 = vclz %v2609_v24  ;;  %v902_v8 = vor.u32 %v901_v57, %v900_v39  ;;  %v903_v30 = vshll.u32 %v2843_v38, %v891_v22  ;;  %v904_v42 = vshrl.u32 %v2844_v40, %v892_v45 }
  0x7a   :  { %v906_v11 = vshll.u32 %v2844_v40, %v891_v22  ;;  %vm548_vm5 = vcmp.lt.s32.totalorder %v3216_v17, 2  ;;  %vm755_vm6 = vcmp.lt.s32.totalorder %v3218_v18, 2  ;;  %v907_v15 = vshrl.u32 %v2845_v48, %v892_v45 }
  0x7b   :  { %v2610_v12 = vadd.s32 4294967294, %v625_v60  ;;  %vm909_vm7 = vcmp.lt.s32.totalorder %v890_v53, 1  ;;  %vm910_vm8 = vcmp.lt.s32.totalorder %v890_v53, 2  ;;  %vm545_vm12 = vweird.f32 %v2876_v4 }
  0x7c   :  { %v905_v13 = vor.u32 %v904_v42, %v903_v30  ;;  %vm911_vm10 = vcmp.lt.s32.totalorder %v890_v53, 3  ;;  %vm912_vm11 = vcmp.lt.s32.totalorder %v890_v53, 4  ;;  %v913_v16 = vsel %vm909_vm7, %v893_v56, %v896_v10 }
  0x7d   :  { %vm2611_vm13 = vcmp.lt.s32.totalorder %v2610_v12, 0  ;;  %v908_v29 = vor.u32 %v907_v15, %v906_v11  ;;  %v914_v46 = vsel %vm912_vm11, %v902_v8, 2102212464  ;;  %v917_v6 = vsel %vm909_vm7, %v896_v10, %v899_v7 }
  0x7e   :  { %v628_v31 = vsel %vm2611_vm13, 0, %v2610_v12  ;;  %v915_v25 = vsel %vm911_vm10, %v899_v7, %v914_v46  ;;  %v918_v41 = vsel %vm912_vm11, %v905_v13, 920167782  ;;  %v921_v0 = vsel %vm909_vm7, %v899_v7, %v902_v8 }
  0x7f   :  { %vm3264_vm14 = vcmp.le.f32.partialorder %v557_v23, 0.7853982  ;;  %v629_v1 = vsub.s32 32, %v628_v31  ;;  %v630_v9 = vshll.u32 %v3223_v44, %v628_v31  ;;  %v633_v49 = vsub.s32 4294967266, %v628_v31 }
  0x80   :  { %v916_v37 = vsel %vm910_vm8, %v913_v16, %v915_v25  ;;  %v919_v59 = vsel %vm911_vm10, %v902_v8, %v918_v41  ;;  %v922_v35 = vsel %vm912_vm11, %v908_v29, 1326507024  ;;  %vm992_vm15 = vcmp.gt.s32.totalorder %v991_v54, 0 }
  0x81   :  { %v932_v62 = vmul.u32 %v3236_v55, %v916_v37  ;;  %v2751_v22 = vpop.eup %2750  ;;  %v631_v3 = vshrl.u32 %v613_v21, %v629_v1  ;;  %v634_v43 = vadd.s32 127, %v633_v49  ;;  %v920_v23 = vsel %vm910_vm8, %v917_v6, %v919_v59 }
  0x82   :  { %v923_v27 = vsel %vm911_vm10, %v905_v13, %v922_v35  ;;  %v2753_v45 = vpop.eup %2752  ;;  %v553_v47 = vxor.u32 2147483648, %v2751_v22  ;;  %v3277_v14 = vmul.u32.u64.low %v3236_v55, %v920_v23  ;;  %v3278_v51 = vmul.u32.u64.high %v3236_v55, %v920_v23, %v3277_v14 }
  0x83   :  { %v924_v44 = vsel %vm910_vm8, %v921_v0, %v923_v27  ;;  %v550_v52 = vxor.u32 2147483648, %v2753_v45  ;;  %v632_v5 = vor.u32 %v631_v3, %v630_v9  ;;  %v635_v28 = vshll.u32 %v634_v43, 23 }
  0x84   :  { %v993_v2 = vsel %vm992_vm15, %v991_v54, 0  ;;  %v554_v39 = vsel %vm552_vm1, %v553_v47, %v2753_v45  ;;  %v761_v21 = vsel %vm759_vm2, %v553_v47, %v2753_v45  ;;  %v935_v8 = vadd.s32 1, %v3278_v51 }
  0x85   :  { %v3286_v24 = vmul.u32.u64.low %v3236_v55, %v924_v44  ;;  %v3287_v56 = vmul.u32.u64.high %v3236_v55, %v924_v44, %v3286_v24  ;;  %v551_v53 = vsel %vm549_vm3, %v2751_v22, %v550_v52  ;;  %v758_v57 = vsel %vm756_vm4, %v2751_v22, %v550_v52 }
  0x86   :  { %v636_v60 = vor.u32 4788187, %v635_v28  ;;  %v639_v10 = vcvt.s32.f32 %v632_v5  ;;  %v555_v54 = vsel %vm548_vm5, %v551_v53, %v554_v39  ;;  %v762_v7 = vsel %vm755_vm6, %v758_v57, %v761_v21 }
  0x87   :  { %v3298_v30 = vshrl.u32 %v993_v2, 5  ;;  %v556_v55 = vsel %vm545_vm12, nan, %v555_v54  ;;  %v763_v42 = vsel %vm545_vm12, nan, %v762_v7  ;;  %v995_v12 = vand.u32 31, %v993_v2 }
  0x88   :  { %v637_v11 = vand.u32 2147483647, %v636_v60  ;;  %868 = vst [vmem:[#allocation5 + $0x30] sm:$0xff] %v556_v55  ;;  %870 = vst [vmem:[#allocation5 + $0x38] sm:$0xff] %v763_v42  ;;  %v646_v17 = vsel %vm3264_vm14, 0, %v3248_v33  ;;  %vm934_vm0 = vc.u32 %v3287_v56, %v3277_v14  ;;  %v989_v18 = vor.u32 8388608, %v3242_v58 }
  0x89   :  { %vm1013_vm1 = vcmp.lt.s32.totalorder %v3298_v30, 1  ;;  %v936_v13 = vsel %vm934_vm0, %v935_v8, %v3278_v51  ;;  %v996_v4 = vsub.s32 32, %v995_v12  ;;  %v998_v16 = vshll.u32 %v2840_v32, %v995_v12  ;;  %v3354_v55 = vld [vmem:[#allocation5] sm:$0xff] }
  0x8a   :  { %v640_v15 = vmul.f32 %v639_v10, %v637_v11  ;;  %v937_v29 = vadd.s32 %v936_v13, %v932_v62  ;;  %v1001_v46 = vshll.u32 %v2841_v34, %v995_v12  ;;  %v1004_v6 = vshll.u32 %v2842_v36, %v995_v12  ;;  %v3367_v13 = vld [vmem:[#allocation5 + $0x8] sm:$0xff] }
  0x8b   :  { %v1007_v33 = vshll.u32 %v2843_v38, %v995_v12  ;;  %v997_v25 = vshrl.u32 %v2840_v32, %v996_v4  ;;  %v999_v58 = vshrl.u32 %v2841_v34, %v996_v4  ;;  %v1002_v41 = vshrl.u32 %v2842_v36, %v996_v4 }
  0x8c   :  { %v641_v31 = vxor.u32 2147483648, %v640_v15  ;;  %v938_v0 = vadd.s32 536870912, %v937_v29  ;;  %v1005_v1 = vshrl.u32 %v2843_v38, %v996_v4  ;;  %v1008_v9 = vshrl.u32 %v2844_v40, %v996_v4 }
  0x8d   :  { %v1010_v49 = vshll.u32 %v2844_v40, %v995_v12  ;;  %v1000_v59 = vor.u32 %v999_v58, %v998_v16  ;;  %v1003_v35 = vor.u32 %v1002_v41, %v1001_v46  ;;  %v1011_v62 = vshrl.u32 %v2845_v48, %v996_v4 }
  0x8e   :  { %v642_v37 = vsel %vm559_vm9, %v641_v31, %v640_v15  ;;  %v939_v3 = vshrl.u32 %v938_v0, 30  ;;  %v1006_v43 = vor.u32 %v1005_v1, %v1004_v6  ;;  %v1009_v23 = vor.u32 %v1008_v9, %v1007_v33 }
  0x8f   :  { %v645_v22 = vsel %vm3264_vm14, %v2888_v26, %v642_v37  ;;  %v1012_v27 = vor.u32 %v1011_v62, %v1010_v49  ;;  %vm1015_vm2 = vcmp.lt.s32.totalorder %v3298_v30, 3  ;;  %vm1016_vm3 = vcmp.lt.s32.totalorder %v3298_v30, 4 }
  0x90   :  { %2754 = vcosq.f32 %v645_v22  ;;  %v940_v45 = vshll.u32 %v939_v3, 30  ;;  %vm1014_vm9 = vcmp.lt.s32.totalorder %v3298_v30, 2  ;;  %v1018_v47 = vsel %vm1016_vm3, %v1006_v43, 2102212464 }
  0x91   :  { %2756 = vsinq.f32 %v645_v22  ;;  %v1021_v44 = vsel %vm1013_vm1, %v1000_v59, %v1003_v35  ;;  %v1022_v51 = vsel %vm1016_vm3, %v1009_v23, 920167782  ;;  %v1029_v63 = vshll.u32 %v989_v18, 8 }
  0x92   :  { %v650_v52 = vadd.s32 3, %v646_v17  ;;  %v3333_v5 = vsub.s32 %v937_v29, %v940_v45  ;;  %v1023_v28 = vsel %vm1015_vm2, %v1006_v43, %v1022_v51  ;;  %v1025_v2 = vsel %vm1013_vm1, %v1003_v35, %v1006_v43 }
  0x93   :  { %v1017_v39 = vsel %vm1013_vm1, %v997_v25, %v1000_v59  ;;  %v1019_v21 = vsel %vm1015_vm2, %v1003_v35, %v1018_v47  ;;  %v1024_v24 = vsel %vm1014_vm9, %v1021_v44, %v1023_v28  ;;  %v1026_v53 = vsel %vm1016_vm3, %v1012_v27, 1326507024 }
  0x94   :  { %v857_v57 = vand.u32 3, %v646_v17  ;;  %v943_v60 = vsub.s32 0, %v3333_v5  ;;  %v1027_v10 = vsel %vm1015_vm2, %v1009_v23, %v1026_v53  ;;  %v3357_v42 = vmul.f32 25.132742, %v3354_v55 }
  0x95   :  { %v1028_v54 = vsel %vm1014_vm9, %v1025_v2, %v1027_v10  ;;  %v3350_v7 = vmul.u32.u64.low %v1029_v63, %v1024_v24  ;;  %v3351_v8 = vmul.u32.u64.high %v1029_v63, %v1024_v24, %v3350_v7  ;;  %v651_v11 = vand.u32 3, %v650_v52 }
  0x96   :  { %v2621_v12 = vmin.u32 %v943_v60, %v3333_v5  ;;  %v1020_v17 = vsel %vm1014_vm9, %v1017_v39, %v1019_v21  ;;  %vm649_vm4 = vweird.f32 %v2888_v26  ;;  %vm879_vm5 = vcmp.lt.s32.totalorder %v2976_v19, 0 }
  0x97   :  { %v3364_v18 = vmul.u32.u64.low %v1029_v63, %v1028_v54  ;;  %v3365_v15 = vmul.u32.u64.high %v1029_v63, %v1028_v54, %v3364_v18  ;;  %v3370_v4 = vmul.f32 25.132742, %v3367_v13  ;;  %vm858_vm6 = vcmp.lt.s32.totalorder %v857_v57, 2 }
  0x98   :  { %v945_v16 = vclz %v2621_v12  ;;  %v963_v29 = vsub.s32 4, %v939_v3  ;;  %v1301_v46 = vand.u32 2147483647, %v3357_v42  ;;  %vm859_vm7 = vcmp.eq.s32.totalorder %v857_v57, 0 }
  0x99   :  { %v1036_v30 = vmul.u32 %v1029_v63, %v1020_v17  ;;  %v1039_v6 = vadd.s32 1, %v3351_v8  ;;  %v1304_v33 = vand.u32 2139095040, %v3357_v42  ;;  %vm652_vm8 = vcmp.lt.s32.totalorder %v651_v11, 2 }
  0x9a   :  { %vm653_vm12 = vcmp.eq.s32.totalorder %v651_v11, 0  ;;  %vm862_vm10 = vcmp.eq.s32.totalorder %v857_v57, 2  ;;  %v2622_v31 = vadd.s32 4294967294, %v945_v16  ;;  %vm656_vm11 = vcmp.eq.s32.totalorder %v651_v11, 2 }
  0x9b   :  { %v933_v25 = vadd.s32 %v3277_v14, %v3287_v56  ;;  %vm1038_vm13 = vc.u32 %v3365_v15, %v3350_v7  ;;  %v1305_v58 = vshrl.u32 %v1304_v33, 23  ;;  %v964_v0 = vsel %vm879_vm5, %v963_v29, %v939_v3 }
  0x9c   :  { %vm2623_vm14 = vcmp.lt.s32.totalorder %v2622_v31, 0  ;;  %v1040_v1 = vsel %vm1038_vm13, %v1039_v6, %v3351_v8  ;;  %v1308_v9 = vand.u32 8388607, %v1301_v46  ;;  %vm3400_vm0 = vcmp.le.f32.partialorder %v877_v61, 0.7853982 }
  0x9d   :  { %v2755_v41 = vpop.eup %2754  ;;  %v948_v59 = vsel %vm2623_vm14, 0, %v2622_v31  ;;  %v1041_v35 = vadd.s32 %v1040_v1, %v1036_v30  ;;  %v2636_v62 = vadd.s32 4294967169, %v1305_v58  ;;  %v966_v26 = vsel %vm3400_vm0, 0, %v964_v0 }
  0x9e   :  { %v2757_v49 = vpop.eup %2756  ;;  %v657_v37 = vxor.u32 2147483648, %v2755_v41  ;;  %v949_v56 = vsub.s32 32, %v948_v59  ;;  %v950_v22 = vshll.u32 %v3333_v5, %v948_v59  ;;  %v953_v43 = vsub.s32 4294967266, %v948_v59 }
  0x9f   :  { %v654_v14 = vxor.u32 2147483648, %v2757_v49  ;;  %v1042_v3 = vadd.s32 536870912, %v1041_v35  ;;  %v1311_v45 = vadd.s32 1, %v2636_v62  ;;  %v1309_v17 = vor.u32 8388608, %v1308_v9 }
  0xa0   :  { %v658_v23 = vsel %vm656_vm11, %v657_v37, %v2757_v49  ;;  %v864_v27 = vsel %vm862_vm10, %v657_v37, %v2757_v49  ;;  %v951_v51 = vshrl.u32 %v933_v25, %v949_v56  ;;  %v954_v63 = vadd.s32 127, %v953_v43 }
  0xa1   :  { %v655_v47 = vsel %vm653_vm12, %v2755_v41, %v654_v14  ;;  %v861_v44 = vsel %vm859_vm7, %v2755_v41, %v654_v14  ;;  %v3391_v2 = vshrl.u32 %v1042_v3, 30  ;;  %vm1312_vm15 = vcmp.gt.s32.totalorder %v1311_v45, 0 }
  0xa2   :  { %v659_v52 = vsel %vm652_vm8, %v655_v47, %v658_v23  ;;  %v865_v28 = vsel %vm858_vm6, %v861_v44, %v864_v27  ;;  %v952_v21 = vor.u32 %v951_v51, %v950_v22  ;;  %v955_v24 = vshll.u32 %v954_v63, 23 }
  0xa3   :  { %v660_v5 = vsel %vm649_vm4, nan, %v659_v52  ;;  %v866_v39 = vsel %vm649_vm4, nan, %v865_v28  ;;  %v1044_v53 = vshll.u32 %v3391_v2, 30  ;;  %v1313_v60 = vsel %vm1312_vm15, %v1311_v45, 0 }
  0xa4   :  { %872 = vst [vmem:[#allocation5 + $0x40] sm:$0xff] %v660_v5  ;;  %874 = vst [vmem:[#allocation5 + $0x48] sm:$0xff] %v866_v39  ;;  %v956_v10 = vor.u32 4788187, %v955_v24  ;;  %v959_v54 = vcvt.s32.f32 %v952_v21  ;;  %v1315_v8 = vand.u32 31, %v1313_v60  ;;  %v1408_v16 = vand.u32 2139095040, %v3370_v4 }
  0xa5   :  { %v3406_v11 = vsub.s32 %v1041_v35, %v1044_v53  ;;  %v970_v25 = vadd.s32 3, %v966_v26  ;;  %v3414_v58 = vand.u32 3, %v966_v26  ;;  %v1037_v41 = vadd.s32 %v3350_v7, %v3365_v15 }
  0xa6   :  { %v957_v12 = vand.u32 2147483647, %v956_v10  ;;  %v1316_v18 = vsub.s32 32, %v1315_v8  ;;  %v1318_v61 = vshll.u32 %v2840_v32, %v1315_v8  ;;  %v1321_v30 = vshll.u32 %v2841_v34, %v1315_v8 }
  0xa7   :  { %v1047_v29 = vsub.s32 0, %v3406_v11  ;;  %v1314_v9 = vshrl.u32 %v1313_v60, 5  ;;  %v3419_v49 = vshll.u32 %v1309_v17, 8  ;;  %v1409_v37 = vshrl.u32 %v1408_v16, 23 }
  0xa8   :  { %v960_v6 = vmul.f32 %v959_v54, %v957_v12  ;;  %v1319_v33 = vshrl.u32 %v2841_v34, %v1316_v18  ;;  %v1322_v31 = vshrl.u32 %v2842_v36, %v1316_v18  ;;  %v1317_v35 = vshrl.u32 %v2840_v32, %v1316_v18 }
  0xa9   :  { %v2625_v0 = vmin.u32 %v1047_v29, %v3406_v11  ;;  %v1324_v22 = vshll.u32 %v2842_v36, %v1315_v8  ;;  %v1325_v43 = vshrl.u32 %v2843_v38, %v1316_v18  ;;  %v1327_v7 = vshll.u32 %v2843_v38, %v1315_v8 }
  0xaa   :  { %v961_v1 = vxor.u32 2147483648, %v960_v6  ;;  %v1320_v62 = vor.u32 %v1319_v33, %v1318_v61  ;;  %v1323_v14 = vor.u32 %v1322_v31, %v1321_v30  ;;  %v1328_v27 = vshrl.u32 %v2844_v40, %v1316_v18 }
  0xab   :  { %v1049_v59 = vclz %v2625_v0  ;;  %v1330_v3 = vshll.u32 %v2844_v40, %v1315_v8  ;;  %v1326_v45 = vor.u32 %v1325_v43, %v1324_v22  ;;  %v1331_v47 = vshrl.u32 %v2845_v48, %v1316_v18 }
  0xac   :  { %v962_v56 = vsel %vm879_vm5, %v961_v1, %v960_v6  ;;  %vm1333_vm1 = vcmp.lt.s32.totalorder %v1314_v9, 1  ;;  %vm983_vm2 = vcmp.lt.s32.totalorder %v2979_v20, 0  ;;  %v1329_v44 = vor.u32 %v1328_v27, %v1327_v7 }
  0xad   :  { %v965_v15 = vsel %vm3400_vm0, %v2976_v19, %v962_v56  ;;  %v2626_v23 = vadd.s32 4294967294, %v1049_v59  ;;  %vm1334_vm9 = vcmp.lt.s32.totalorder %v1314_v9, 2  ;;  %v1332_v63 = vor.u32 %v1331_v47, %v1330_v3 }
  0xae   :  { %2758 = vcosq.f32 %v965_v15  ;;  %vm1335_vm4 = vcmp.lt.s32.totalorder %v1314_v9, 3  ;;  %vm1336_vm5 = vcmp.lt.s32.totalorder %v1314_v9, 4  ;;  %v1337_v39 = vsel %vm1333_vm1, %v1317_v35, %v1320_v62 }
  0xaf   :  { %2760 = vsinq.f32 %v965_v15  ;;  %vm2627_vm3 = vcmp.lt.s32.totalorder %v2626_v23, 0  ;;  %vm3438_vm6 = vcmp.le.f32.partialorder %v981_v50, 0.7853982  ;;  %v1338_v24 = vsel %vm1336_vm5, %v1326_v45, 2102212464 }
  0xb0   :  { %v1052_v51 = vsel %vm2627_vm3, 0, %v2626_v23  ;;  %v1341_v53 = vsel %vm1333_vm1, %v1320_v62, %v1323_v14  ;;  %v1342_v60 = vsel %vm1336_vm5, %v1329_v44, 920167782  ;;  %v1345_v57 = vsel %vm1333_vm1, %v1323_v14, %v1326_v45 }
  0xb1   :  { %v1053_v52 = vsub.s32 32, %v1052_v51  ;;  %v1054_v28 = vshll.u32 %v3406_v11, %v1052_v51  ;;  %v1057_v5 = vsub.s32 4294967266, %v1052_v51  ;;  %v1339_v8 = vsel %vm1335_vm4, %v1323_v14, %v1338_v24 }
  0xb2   :  { %v1343_v26 = vsel %vm1335_vm4, %v1326_v45, %v1342_v60  ;;  %v1067_v11 = vsub.s32 4, %v3391_v2  ;;  %v1346_v12 = vsel %vm1336_vm5, %v1332_v63, 1326507024  ;;  %v2640_v17 = vadd.s32 4294967169, %v1409_v37 }
  0xb3   :  { %v1055_v10 = vshrl.u32 %v1037_v41, %v1053_v52  ;;  %v1058_v54 = vadd.s32 127, %v1057_v5  ;;  %v1344_v50 = vsel %vm1334_vm9, %v1341_v53, %v1343_v26  ;;  %v971_v18 = vand.u32 3, %v970_v25 }
  0xb4   :  { %v1347_v61 = vsel %vm1335_vm4, %v1329_v44, %v1346_v12  ;;  %vm969_vm7 = vweird.f32 %v2976_v19  ;;  %v1340_v30 = vsel %vm1334_vm9, %v1337_v39, %v1339_v8  ;;  %vm1179_vm8 = vcmp.lt.s32.totalorder %v3414_v58, 2 }
  0xb5   :  { %v1056_v16 = vor.u32 %v1055_v10, %v1054_v28  ;;  %v1059_v29 = vshll.u32 %v1058_v54, 23  ;;  %v1348_v6 = vsel %vm1334_vm9, %v1345_v57, %v1347_v61  ;;  %vm1180_vm12 = vcmp.eq.s32.totalorder %v3414_v58, 0 }
  0xb6   :  { %v3456_v33 = vmul.u32.u64.low %v3419_v49, %v1344_v50  ;;  %v3457_v31 = vmul.u32.u64.high %v3419_v49, %v1344_v50, %v3456_v33  ;;  %v3461_v1 = vmul.u32.u64.low %v3419_v49, %v1348_v6  ;;  %v3462_v25 = vmul.u32.u64.high %v3419_v49, %v1348_v6, %v3461_v1 }
  0xb7   :  { %v1060_v41 = vor.u32 4788187, %v1059_v29  ;;  %v1063_v0 = vcvt.s32.f32 %v1056_v16  ;;  %v1068_v9 = vsel %vm983_vm2, %v1067_v11, %v3391_v2  ;;  %v1415_v37 = vadd.s32 1, %v2640_v17 }
  0xb8   :  { %vm1183_vm10 = vcmp.eq.s32.totalorder %v3414_v58, 2  ;;  %v1356_v35 = vmul.u32 %v3419_v49, %v1340_v30  ;;  %v1405_v62 = vand.u32 2147483647, %v3370_v4  ;;  %vm972_vm11 = vcmp.lt.s32.totalorder %v971_v18, 2 }
  0xb9   :  { %v1061_v59 = vand.u32 2147483647, %v1060_v41  ;;  %vm976_vm13 = vcmp.eq.s32.totalorder %v971_v18, 2  ;;  %v1359_v14 = vadd.s32 1, %v3457_v31  ;;  %vm1416_vm14 = vcmp.gt.s32.totalorder %v1415_v37, 0 }
  0xba   :  { %v1070_v43 = vsel %vm3438_vm6, 0, %v1068_v9  ;;  %vm1358_vm15 = vc.u32 %v3462_v25, %v3456_v33  ;;  %v1417_v2 = vsel %vm1416_vm14, %v1415_v37, 0  ;;  %vm973_vm0 = vcmp.eq.s32.totalorder %v971_v18, 0 }
  0xbb   :  { %v2759_v56 = vpop.eup %2758  ;;  %v1064_v22 = vmul.f32 %v1063_v0, %v1061_v59  ;;  %v1360_v49 = vsel %vm1358_vm15, %v1359_v14, %v3457_v31  ;;  %v1419_v23 = vand.u32 31, %v1417_v2  ;;  %v1412_v47 = vand.u32 8388607, %v1405_v62 }
  0xbc   :  { %v2761_v7 = vpop.eup %2760  ;;  %v977_v15 = vxor.u32 2147483648, %v2759_v56  ;;  %v1361_v45 = vadd.s32 %v1360_v49, %v1356_v35  ;;  %v1074_v63 = vadd.s32 3, %v1070_v43  ;;  %v3505_v12 = vand.u32 3, %v1070_v43 }
  0xbd   :  { %v974_v27 = vxor.u32 2147483648, %v2761_v7  ;;  %v1065_v3 = vxor.u32 2147483648, %v1064_v22  ;;  %v1420_v52 = vsub.s32 32, %v1419_v23  ;;  %v1422_v10 = vshll.u32 %v2840_v32, %v1419_v23 }
  0xbe   :  { %v978_v44 = vsel %vm976_vm13, %v977_v15, %v2761_v7  ;;  %v1185_v51 = vsel %vm1183_vm10, %v977_v15, %v2761_v7  ;;  %v1362_v24 = vadd.s32 536870912, %v1361_v45  ;;  %v1425_v11 = vshll.u32 %v2841_v34, %v1419_v23 }
  0xbf   :  { %v975_v28 = vsel %vm973_vm0, %v2759_v56, %v974_v27  ;;  %v1182_v5 = vsel %vm1180_vm12, %v2759_v56, %v974_v27  ;;  %v1066_v39 = vsel %vm983_vm2, %v1065_v3, %v1064_v22  ;;  %v1423_v58 = vshrl.u32 %v2841_v34, %v1420_v52 }
  0xc0   :  { %v979_v53 = vsel %vm972_vm11, %v975_v28, %v978_v44  ;;  %v1186_v60 = vsel %vm1179_vm8, %v1182_v5, %v1185_v51  ;;  %v1069_v57 = vsel %vm3438_vm6, %v2979_v20, %v1066_v39  ;;  %v3498_v26 = vshrl.u32 %v1362_v24, 30 }
  0xc1   :  { %v980_v54 = vsel %vm969_vm7, nan, %v979_v53  ;;  %v1187_v8 = vsel %vm969_vm7, nan, %v1186_v60  ;;  %2762 = vcosq.f32 %v1069_v57  ;;  %v1426_v21 = vshrl.u32 %v2842_v36, %v1420_v52 }
  0xc2   :  { %1292 = vst [vmem:[#allocation5 + $0x50] sm:$0xff] %v980_v54  ;;  %1294 = vst [vmem:[#allocation5 + $0x58] sm:$0xff] %v1187_v8  ;;  %2764 = vsinq.f32 %v1069_v57  ;;  %v3503_v50 = vand.u32 3, %v1074_v63  ;;  %v1364_v17 = vshll.u32 %v3498_v26, 30  ;;  %v1418_v19 = vshrl.u32 %v1417_v2, 5 }
  0xc3   :  { %v1428_v18 = vshll.u32 %v2842_v36, %v1419_v23  ;;  %v1429_v16 = vshrl.u32 %v2843_v38, %v1420_v52  ;;  %v1431_v29 = vshll.u32 %v2843_v38, %v1419_v23  ;;  %v1432_v61 = vshrl.u32 %v2844_v40, %v1420_v52 }
  0xc4   :  { %v3512_v30 = vsub.s32 %v1361_v45, %v1364_v17  ;;  %v1413_v6 = vor.u32 8388608, %v1412_v47  ;;  %v1421_v31 = vshrl.u32 %v2840_v32, %v1420_v52  ;;  %v1434_v41 = vshll.u32 %v2844_v40, %v1419_v23 }
  0xc5   :  { %v1424_v0 = vor.u32 %v1423_v58, %v1422_v10  ;;  %v1427_v1 = vor.u32 %v1426_v21, %v1425_v11  ;;  %v1433_v9 = vor.u32 %v1432_v61, %v1431_v29  ;;  %v1435_v37 = vshrl.u32 %v2845_v48, %v1420_v52 }
  0xc6   :  { %vm1283_vm1 = vcmp.eq.s32.totalorder %v3505_v12, 0  ;;  %vm1286_vm2 = vcmp.eq.s32.totalorder %v3505_v12, 2  ;;  %v1367_v59 = vsub.s32 0, %v3512_v30  ;;  %vm1437_vm3 = vcmp.lt.s32.totalorder %v1418_v19, 1 }
  0xc7   :  { %vm1076_vm9 = vcmp.lt.s32.totalorder %v3503_v50, 2  ;;  %vm1282_vm4 = vcmp.lt.s32.totalorder %v3505_v12, 2  ;;  %v1430_v35 = vor.u32 %v1429_v16, %v1428_v18  ;;  %v1436_v14 = vor.u32 %v1435_v37, %v1434_v41 }
  0xc8   :  { %vm1440_vm5 = vcmp.lt.s32.totalorder %v1418_v19, 4  ;;  %vm1073_vm6 = vweird.f32 %v2979_v20  ;;  %v2637_v56 = vmin.u32 %v1367_v59, %v3512_v30  ;;  %vm1438_vm7 = vcmp.lt.s32.totalorder %v1418_v19, 2 }
  0xc9   :  { %vm1439_vm8 = vcmp.lt.s32.totalorder %v1418_v19, 3  ;;  %v1453_v22 = vshll.u32 %v1413_v6, 8  ;;  %v1441_v43 = vsel %vm1437_vm3, %v1421_v31, %v1424_v0  ;;  %v1442_v2 = vsel %vm1440_vm5, %v1430_v35, 2102212464 }
  0xca   :  { %v1445_v7 = vsel %vm1437_vm3, %v1424_v0, %v1427_v1  ;;  %v1446_v15 = vsel %vm1440_vm5, %v1433_v9, 920167782  ;;  %vm1077_vm12 = vcmp.eq.s32.totalorder %v3503_v50, 0  ;;  %vm1080_vm10 = vcmp.eq.s32.totalorder %v3503_v50, 2 }
  0xcb   :  { %v1369_v49 = vclz %v2637_v56  ;;  %v3531_v23 = vmul.f32 50.265484, %v3354_v55  ;;  %v1443_v27 = vsel %vm1439_vm8, %v1427_v1, %v1442_v2  ;;  %v1447_v3 = vsel %vm1439_vm8, %v1430_v35, %v1446_v15 }
  0xcc   :  { %v1449_v45 = vsel %vm1437_vm3, %v1427_v1, %v1430_v35  ;;  %v1450_v47 = vsel %vm1440_vm5, %v1436_v14, 1326507024  ;;  %v1444_v51 = vsel %vm1438_vm7, %v1441_v43, %v1443_v27  ;;  %v1448_v63 = vsel %vm1438_vm7, %v1445_v7, %v1447_v3 }
  0xcd   :  { %v2638_v44 = vadd.s32 4294967294, %v1369_v49  ;;  %v1451_v52 = vsel %vm1439_vm8, %v1433_v9, %v1450_v47  ;;  %v1357_v5 = vadd.s32 %v3456_v33, %v3462_v25  ;;  %v1460_v11 = vmul.u32 %v1453_v22, %v1444_v51 }
  0xce   :  { %v2763_v28 = vpop.eup %2762  ;;  %v1452_v39 = vsel %vm1438_vm7, %v1449_v45, %v1451_v52  ;;  %v3543_v24 = vmul.u32.u64.low %v1453_v22, %v1448_v63  ;;  %v3544_v53 = vmul.u32.u64.high %v1453_v22, %v1448_v63, %v3543_v24  ;;  %v1728_v21 = vand.u32 2139095040, %v3531_v23 }
  0xcf   :  { %v2765_v60 = vpop.eup %2764  ;;  %v1081_v57 = vxor.u32 2147483648, %v2763_v28  ;;  %vm2639_vm11 = vcmp.lt.s32.totalorder %v2638_v44, 0  ;;  %v3547_v10 = vmul.u32.u64.low %v1453_v22, %v1452_v39  ;;  %v3548_v54 = vmul.u32.u64.high %v1453_v22, %v1452_v39, %v3547_v10 }
  0xd0   :  { %v1078_v8 = vxor.u32 2147483648, %v2765_v60  ;;  %v1372_v58 = vsel %vm2639_vm11, 0, %v2638_v44  ;;  %v1463_v61 = vadd.s32 1, %v3544_v53  ;;  %v1387_v0 = vsub.s32 4, %v3498_v26 }
  0xd1   :  { %v1082_v33 = vsel %vm1080_vm10, %v1081_v57, %v2765_v60  ;;  %v1288_v25 = vsel %vm1286_vm2, %v1081_v57, %v2765_v60  ;;  %v1373_v17 = vsub.s32 32, %v1372_v58  ;;  %v1374_v19 = vshll.u32 %v3512_v30, %v1372_v58 }
  0xd2   :  { %v1079_v18 = vsel %vm1077_vm12, %v2763_v28, %v1078_v8  ;;  %v1285_v16 = vsel %vm1283_vm1, %v2763_v28, %v1078_v8  ;;  %v1377_v29 = vsub.s32 4294967266, %v1372_v58  ;;  %vm1462_vm13 = vc.u32 %v3548_v54, %v3543_v24 }
  0xd3   :  { %v1083_v6 = vsel %vm1076_vm9, %v1079_v18, %v1082_v33  ;;  %v1289_v31 = vsel %vm1282_vm4, %v1285_v16, %v1288_v25  ;;  %v1375_v41 = vshrl.u32 %v1357_v5, %v1373_v17  ;;  %v1464_v37 = vsel %vm1462_vm13, %v1463_v61, %v3544_v53 }
  0xd4   :  { %v1084_v30 = vsel %vm1073_vm6, nan, %v1083_v6  ;;  %v1290_v1 = vsel %vm1073_vm6, nan, %v1289_v31  ;;  %v1378_v9 = vadd.s32 127, %v1377_v29  ;;  %v1729_v12 = vshrl.u32 %v1728_v21, 23 }
  0xd5   :  { %1296 = vst [vmem:[#allocation5 + $0x60] sm:$0xff] %v1084_v30  ;;  %1298 = vst [vmem:[#allocation5 + $0x68] sm:$0xff] %v1290_v1  ;;  %v1376_v50 = vor.u32 %v1375_v41, %v1374_v19  ;;  %v1465_v35 = vadd.s32 %v1464_v37, %v1460_v11  ;;  %vm1303_vm14 = vcmp.lt.s32.totalorder %v3357_v42, 0  ;;  %v1725_v14 = vand.u32 2147483647, %v3531_v23 }
  0xd6   :  { %v1379_v59 = vshll.u32 %v1378_v9, 23  ;;  %v2652_v56 = vadd.s32 4294967169, %v1729_v12  ;;  %v1388_v43 = vsel %vm1303_vm14, %v1387_v0, %v3498_v26  ;;  %vm3580_vm15 = vcmp.le.f32.partialorder %v1301_v46, 0.7853982 }
  0xd7   :  { %v1383_v20 = vcvt.s32.f32 %v1376_v50  ;;  %v1466_v2 = vadd.s32 536870912, %v1465_v35  ;;  %v3587_v3 = vmul.f32 50.265484, %v3367_v13  ;;  %v1390_v45 = vsel %vm3580_vm15, 0, %v1388_v43 }
  0xd8   :  { %v1380_v22 = vor.u32 4788187, %v1379_v59  ;;  %v1735_v15 = vadd.s32 1, %v2652_v56  ;;  %v1732_v26 = vand.u32 8388607, %v1725_v14  ;;  %v1394_v28 = vadd.s32 3, %v1390_v45 }
  0xd9   :  { %v3584_v27 = vshrl.u32 %v1466_v2, 30  ;;  %v1829_v51 = vand.u32 2147483647, %v3587_v3  ;;  %v3598_v13 = vmul.f32 100.53097, %v3354_v55  ;;  %v3600_v39 = vand.u32 3, %v1390_v45 }
  0xda   :  { %v1381_v49 = vand.u32 2147483647, %v1380_v22  ;;  %vm1736_vm0 = vcmp.gt.s32.totalorder %v1735_v15, 0  ;;  %v1733_v53 = vor.u32 8388608, %v1732_v26  ;;  %v1832_v57 = vand.u32 2139095040, %v3587_v3 }
  0xdb   :  { %v1468_v46 = vshll.u32 %v3584_v27, 30  ;;  %v1737_v44 = vsel %vm1736_vm0, %v1735_v15, 0  ;;  %v3609_v11 = vand.u32 8388607, %v1829_v51  ;;  %v3617_v17 = vand.u32 3, %v1394_v28 }
  0xdc   :  { %v1384_v47 = vmul.f32 %v1383_v20, %v1381_v49  ;;  %v1739_v63 = vand.u32 31, %v1737_v44  ;;  %v1461_v19 = vadd.s32 %v3543_v24, %v3548_v54  ;;  %v1738_v16 = vshrl.u32 %v1737_v44, 5 }
  0xdd   :  { %v3595_v5 = vsub.s32 %v1465_v35, %v1468_v46  ;;  %v3622_v29 = vshll.u32 %v1733_v53, 8  ;;  %v1833_v61 = vshrl.u32 %v1832_v57, 23  ;;  %v1837_v0 = vor.u32 8388608, %v3609_v11 }
  0xde   :  { %v1385_v52 = vxor.u32 2147483648, %v1384_v47  ;;  %v1740_v60 = vsub.s32 32, %v1739_v63  ;;  %v1742_v58 = vshll.u32 %v2840_v32, %v1739_v63  ;;  %v1745_v33 = vshll.u32 %v2841_v34, %v1739_v63 }
  0xdf   :  { %v1471_v8 = vsub.s32 0, %v3595_v5  ;;  %v1748_v1 = vshll.u32 %v2842_v36, %v1739_v63  ;;  %v1751_v24 = vshll.u32 %v2843_v38, %v1739_v63  ;;  %v1754_v37 = vshll.u32 %v2844_v40, %v1739_v63 }
  0xe0   :  { %v1386_v10 = vsel %vm1303_vm14, %v1385_v52, %v1384_v47  ;;  %v1743_v21 = vshrl.u32 %v2841_v34, %v1740_v60  ;;  %v1746_v25 = vshrl.u32 %v2842_v36, %v1740_v60  ;;  %v1741_v31 = vshrl.u32 %v2840_v32, %v1740_v60 }
  0xe1   :  { %v1389_v55 = vsel %vm3580_vm15, %v3357_v42, %v1386_v10  ;;  %v2641_v18 = vmin.u32 %v1471_v8, %v3595_v5  ;;  %v1749_v9 = vshrl.u32 %v2843_v38, %v1740_v60  ;;  %v1752_v50 = vshrl.u32 %v2844_v40, %v1740_v60 }
  0xe2   :  { %2766 = vcosq.f32 %v1389_v55  ;;  %v1744_v41 = vor.u32 %v1743_v21, %v1742_v58  ;;  %v1747_v30 = vor.u32 %v1746_v25, %v1745_v33  ;;  %v1755_v12 = vshrl.u32 %v2845_v48, %v1740_v60 }
  0xe3   :  { %2768 = vsinq.f32 %v1389_v55  ;;  %v1473_v6 = vclz %v2641_v18  ;;  %vm1400_vm1 = vcmp.eq.s32.totalorder %v3617_v17, 2  ;;  %vm1607_vm2 = vcmp.eq.s32.totalorder %v3600_v39, 2 }
  0xe4   :  { %v1750_v59 = vor.u32 %v1749_v9, %v1748_v1  ;;  %vm1757_vm3 = vcmp.lt.s32.totalorder %v1738_v16, 1  ;;  %vm1758_vm9 = vcmp.lt.s32.totalorder %v1738_v16, 2  ;;  %v2656_v35 = vadd.s32 4294967169, %v1833_v61 }
  0xe5   :  { %v2642_v54 = vadd.s32 4294967294, %v1473_v6  ;;  %vm1397_vm4 = vcmp.eq.s32.totalorder %v3617_v17, 0  ;;  %vm1604_vm5 = vcmp.eq.s32.totalorder %v3600_v39, 0  ;;  %vm1407_vm6 = vcmp.lt.s32.totalorder %v3370_v4, 0 }
  0xe6   :  { %v1753_v56 = vor.u32 %v1752_v50, %v1751_v24  ;;  %v1756_v22 = vor.u32 %v1755_v12, %v1754_v37  ;;  %vm1760_vm8 = vcmp.lt.s32.totalorder %v1738_v16, 4  ;;  %vm1396_vm12 = vcmp.lt.s32.totalorder %v3617_v17, 2 }
  0xe7   :  { %vm2643_vm7 = vcmp.lt.s32.totalorder %v2642_v54, 0  ;;  %vm1603_vm10 = vcmp.lt.s32.totalorder %v3600_v39, 2  ;;  %vm1759_vm11 = vcmp.lt.s32.totalorder %v1738_v16, 3  ;;  %v1761_v43 = vsel %vm1757_vm3, %v1741_v31, %v1744_v41 }
  0xe8   :  { %v1476_v20 = vsel %vm2643_vm7, 0, %v2642_v54  ;;  %v1762_v2 = vsel %vm1760_vm8, %v1750_v59, 2102212464  ;;  %vm1393_vm13 = vweird.f32 %v3357_v42  ;;  %v1765_v45 = vsel %vm1757_vm3, %v1744_v41, %v1747_v30 }
  0xe9   :  { %v1477_v7 = vsub.s32 32, %v1476_v20  ;;  %v1478_v15 = vshll.u32 %v3595_v5, %v1476_v20  ;;  %v1481_v49 = vsub.s32 4294967266, %v1476_v20  ;;  %v1763_v26 = vsel %vm1759_vm11, %v1747_v30, %v1762_v2 }
  0xea   :  { %v1766_v47 = vsel %vm1760_vm8, %v1753_v56, 920167782  ;;  %v1769_v46 = vsel %vm1757_vm3, %v1747_v30, %v1750_v59  ;;  %v1770_v44 = vsel %vm1760_vm8, %v1756_v22, 1326507024  ;;  %v1491_v60 = vsub.s32 4, %v3584_v27 }
  0xeb   :  { %v1479_v63 = vshrl.u32 %v1461_v19, %v1477_v7  ;;  %v1482_v52 = vadd.s32 127, %v1481_v49  ;;  %v1767_v28 = vsel %vm1759_vm11, %v1750_v59, %v1766_v47  ;;  %v1771_v53 = vsel %vm1759_vm11, %v1753_v56, %v1770_v44 }
  0xec   :  { %v1768_v57 = vsel %vm1758_vm9, %v1765_v45, %v1767_v28  ;;  %v1772_v10 = vsel %vm1758_vm9, %v1769_v46, %v1771_v53  ;;  %v1839_v8 = vadd.s32 1, %v2656_v35  ;;  %vm3649_vm14 = vcmp.le.f32.partialorder %v1405_v62, 0.7853982 }
  0xed   :  { %v1480_v58 = vor.u32 %v1479_v63, %v1478_v15  ;;  %v1483_v55 = vshll.u32 %v1482_v52, 23  ;;  %v3654_v21 = vmul.u32.u64.low %v3622_v29, %v1772_v10  ;;  %v3655_v33 = vmul.u32.u64.high %v3622_v29, %v1772_v10, %v3654_v21 }
  0xee   :  { %v1764_v19 = vsel %vm1758_vm9, %v1761_v43, %v1763_v26  ;;  %v3659_v18 = vmul.u32.u64.low %v3622_v29, %v1768_v57  ;;  %v3660_v61 = vmul.u32.u64.high %v3622_v29, %v1768_v57, %v3659_v18  ;;  %vm1840_vm15 = vcmp.gt.s32.totalorder %v1839_v8, 0 }
  0xef   :  { %v2767_v25 = vpop.eup %2766  ;;  %v1484_v31 = vor.u32 4788187, %v1483_v55  ;;  %v1487_v41 = vcvt.s32.f32 %v1480_v58  ;;  %v1841_v30 = vsel %vm1840_vm15, %v1839_v8, 0  ;;  %v1492_v9 = vsel %vm1407_vm6, %v1491_v60, %v3584_v27 }
  0xf0   :  { %v2769_v6 = vpop.eup %2768  ;;  %v1401_v62 = vxor.u32 2147483648, %v2767_v25  ;;  %v1843_v24 = vand.u32 31, %v1841_v30  ;;  %v2152_v16 = vand.u32 2139095040, %v3598_v13  ;;  %v1780_v12 = vmul.u32 %v3622_v29, %v1764_v19 }
  0xf1   :  { %v1398_v1 = vxor.u32 2147483648, %v2769_v6  ;;  %v1485_v37 = vand.u32 2147483647, %v1484_v31  ;;  %vm1782_vm0 = vc.u32 %v3655_v33, %v3659_v18  ;;  %v1783_v27 = vadd.s32 1, %v3660_v61 }
  0xf2   :  { %v1402_v54 = vsel %vm1400_vm1, %v1401_v62, %v2769_v6  ;;  %v1609_v50 = vsel %vm1607_vm2, %v1401_v62, %v2769_v6  ;;  %v1844_v43 = vsub.s32 32, %v1843_v24  ;;  %v1846_v15 = vshll.u32 %v2840_v32, %v1843_v24 }
  0xf3   :  { %v1399_v59 = vsel %vm1397_vm4, %v2767_v25, %v1398_v1  ;;  %v1606_v35 = vsel %vm1604_vm5, %v2767_v25, %v1398_v1  ;;  %v1488_v20 = vmul.f32 %v1487_v41, %v1485_v37  ;;  %v1784_v7 = vsel %vm1782_vm0, %v1783_v27, %v3660_v61 }
  0xf4   :  { %v1403_v56 = vsel %vm1396_vm12, %v1399_v59, %v1402_v54  ;;  %v1610_v22 = vsel %vm1603_vm10, %v1606_v35, %v1609_v50  ;;  %v1785_v17 = vadd.s32 %v1784_v7, %v1780_v12  ;;  %v1842_v45 = vshrl.u32 %v1841_v30, 5 }
  0xf5   :  { %v1404_v29 = vsel %vm1393_vm13, nan, %v1403_v56  ;;  %v1611_v2 = vsel %vm1393_vm13, nan, %v1610_v22  ;;  %v1489_v49 = vxor.u32 2147483648, %v1488_v20  ;;  %v1847_v39 = vshrl.u32 %v2841_v34, %v1844_v43 }
  0xf6   :  { %1716 = vst [vmem:[#allocation5 + $0x70] sm:$0xff] %v1404_v29  ;;  %1718 = vst [vmem:[#allocation5 + $0x78] sm:$0xff] %v1611_v2  ;;  %v1849_v26 = vshll.u32 %v2841_v34, %v1843_v24  ;;  %v1850_v47 = vshrl.u32 %v2842_v36, %v1844_v43  ;;  %v1852_v46 = vshll.u32 %v2842_v36, %v1843_v24  ;;  %v1494_v63 = vsel %vm3649_vm14, 0, %v1492_v9 }
  0xf7   :  { %v1853_v42 = vshrl.u32 %v2843_v38, %v1844_v43  ;;  %v1490_v44 = vsel %vm1407_vm6, %v1489_v49, %v1488_v20  ;;  %v1786_v52 = vadd.s32 536870912, %v1785_v17  ;;  %v1855_v28 = vshll.u32 %v2843_v38, %v1843_v24 }
  0xf8   :  { %v1493_v53 = vsel %vm3649_vm14, %v3370_v4, %v1490_v44  ;;  %v1848_v60 = vor.u32 %v1847_v39, %v1846_v15  ;;  %v1851_v57 = vor.u32 %v1850_v47, %v1849_v26  ;;  %v1856_v10 = vshrl.u32 %v2844_v40, %v1844_v43 }
  0xf9   :  { %2770 = vcosq.f32 %v1493_v53  ;;  %v3703_v8 = vshrl.u32 %v1786_v52, 30  ;;  %v1858_v58 = vshll.u32 %v2844_v40, %v1843_v24  ;;  %v1859_v55 = vshrl.u32 %v2845_v48, %v1844_v43 }
  0xfa   :  { %2772 = vsinq.f32 %v1493_v53  ;;  %v1854_v21 = vor.u32 %v1853_v42, %v1852_v46  ;;  %v1857_v25 = vor.u32 %v1856_v10, %v1855_v28  ;;  %vm1861_vm1 = vcmp.lt.s32.totalorder %v1842_v45, 1 }
  0xfb   :  { %v1788_v19 = vshll.u32 %v3703_v8, 30  ;;  %v1860_v61 = vor.u32 %v1859_v55, %v1858_v58  ;;  %vm1863_vm2 = vcmp.lt.s32.totalorder %v1842_v45, 3  ;;  %v1498_v5 = vadd.s32 3, %v1494_v63 }
  0xfc   :  { %v1845_v6 = vshrl.u32 %v2840_v32, %v1844_v43  ;;  %vm1864_vm3 = vcmp.lt.s32.totalorder %v1842_v45, 4  ;;  %v2153_v62 = vshrl.u32 %v2152_v16, 23  ;;  %vm1862_vm9 = vcmp.lt.s32.totalorder %v1842_v45, 2 }
  0xfd   :  { %v3709_v31 = vsub.s32 %v1785_v17, %v1788_v19  ;;  %v1869_v41 = vsel %vm1861_vm1, %v1848_v60, %v1851_v57  ;;  %v1870_v30 = vsel %vm1864_vm3, %v1857_v25, 920167782  ;;  %v1866_v1 = vsel %vm1864_vm3, %v1854_v21, 2102212464 }
  0xfe   :  { %v1871_v9 = vsel %vm1863_vm2, %v1854_v21, %v1870_v30  ;;  %v1874_v24 = vsel %vm1864_vm3, %v1860_v61, 1326507024  ;;  %v1877_v54 = vshll.u32 %v1837_v0, 8  ;;  %v1705_v50 = vand.u32 3, %v1494_v63 }
  0xff   :  { %v1791_v37 = vsub.s32 0, %v3709_v31  ;;  %v1873_v12 = vsel %vm1861_vm1, %v1851_v57, %v1854_v21  ;;  %v1872_v16 = vsel %vm1862_vm9, %v1869_v41, %v1871_v9  ;;  %v1875_v59 = vsel %vm1863_vm2, %v1857_v25, %v1874_v24 }
 0x100   :  { %v2668_v35 = vadd.s32 4294967169, %v2153_v62  ;;  %v1499_v27 = vand.u32 3, %v1498_v5  ;;  %v1865_v22 = vsel %vm1861_vm1, %v1845_v6, %v1848_v60  ;;  %v1867_v20 = vsel %vm1863_vm2, %v1851_v57, %v1866_v1 }
 0x101   :  { %v2653_v56 = vmin.u32 %v1791_v37, %v3709_v31  ;;  %v1876_v11 = vsel %vm1862_vm9, %v1873_v12, %v1875_v59  ;;  %v3723_v0 = vmul.u32.u64.low %v1877_v54, %v1872_v16  ;;  %v3724_v43 = vmul.u32.u64.high %v1877_v54, %v1872_v16, %v3723_v0 }
 0x102   :  { %vm1497_vm4 = vweird.f32 %v3370_v4  ;;  %vm1706_vm5 = vcmp.lt.s32.totalorder %v1705_v50, 2  ;;  %vm1707_vm6 = vcmp.eq.s32.totalorder %v1705_v50, 0  ;;  %vm1727_vm7 = vcmp.lt.s32.totalorder %v3531_v23, 0 }
 0x103   :  { %v1793_v29 = vclz %v2653_v56  ;;  %v1868_v2 = vsel %vm1862_vm9, %v1865_v22, %v1867_v20  ;;  %v3730_v7 = vmul.u32.u64.low %v1877_v54, %v1876_v11  ;;  %v3731_v15 = vmul.u32.u64.high %v1877_v54, %v1876_v11, %v3730_v7 }
 0x104   :  { %v2159_v49 = vadd.s32 1, %v2668_v35  ;;  %vm1500_vm8 = vcmp.lt.s32.totalorder %v1499_v27, 2  ;;  %vm1501_vm12 = vcmp.eq.s32.totalorder %v1499_v27, 0  ;;  %vm1710_vm10 = vcmp.eq.s32.totalorder %v1705_v50, 2 }
 0x105   :  { %v2654_v17 = vadd.s32 4294967294, %v1793_v29  ;;  %vm1504_vm11 = vcmp.eq.s32.totalorder %v1499_v27, 2  ;;  %v1781_v26 = vadd.s32 %v3659_v18, %v3655_v33  ;;  %v1887_v47 = vadd.s32 1, %v3724_v43 }
 0x106   :  { %v2771_v39 = vpop.eup %2770  ;;  %vm2160_vm13 = vcmp.gt.s32.totalorder %v2159_v49, 0  ;;  %v1811_v45 = vsub.s32 4, %v3703_v8  ;;  %v1884_v44 = vmul.u32 %v1877_v54, %v1868_v2  ;;  %vm1886_vm15 = vc.u32 %v3731_v15, %v3723_v0 }
 0x107   :  { %v2773_v46 = vpop.eup %2772  ;;  %v1505_v42 = vxor.u32 2147483648, %v2771_v39  ;;  %vm2655_vm14 = vcmp.lt.s32.totalorder %v2654_v17, 0  ;;  %v2161_v28 = vsel %vm2160_vm13, %v2159_v49, 0  ;;  %v1888_v55 = vsel %vm1886_vm15, %v1887_v47, %v3724_v43 }
 0x108   :  { %v1502_v63 = vxor.u32 2147483648, %v2773_v46  ;;  %v1796_v52 = vsel %vm2655_vm14, 0, %v2654_v17  ;;  %v1889_v61 = vadd.s32 %v1888_v55, %v1884_v44  ;;  %v1812_v30 = vsel %vm1727_vm7, %v1811_v45, %v3703_v8 }
 0x109   :  { %v1506_v53 = vsel %vm1504_vm11, %v1505_v42, %v2773_v46  ;;  %v1712_v60 = vsel %vm1710_vm10, %v1505_v42, %v2773_v46  ;;  %v1797_v57 = vsub.s32 32, %v1796_v52  ;;  %v1798_v33 = vshll.u32 %v3709_v31, %v1796_v52 }
 0x10a   :  { %v1503_v18 = vsel %vm1501_vm12, %v2771_v39, %v1502_v63  ;;  %v1709_v10 = vsel %vm1707_vm6, %v2771_v39, %v1502_v63  ;;  %v1801_v58 = vsub.s32 4294967266, %v1796_v52  ;;  %v2149_v31 = vand.u32 2147483647, %v3598_v13 }
 0x10b   :  { %v1507_v21 = vsel %vm1500_vm8, %v1503_v18, %v1506_v53  ;;  %v1713_v25 = vsel %vm1706_vm5, %v1709_v10, %v1712_v60  ;;  %v1799_v19 = vshrl.u32 %v1781_v26, %v1797_v57  ;;  %v1890_v1 = vadd.s32 536870912, %v1889_v61 }
 0x10c   :  { %v1508_v5 = vsel %vm1497_vm4, nan, %v1507_v21  ;;  %v1714_v6 = vsel %vm1497_vm4, nan, %v1713_v25  ;;  %v1802_v62 = vadd.s32 127, %v1801_v58  ;;  %v2163_v9 = vand.u32 31, %v2161_v28 }
 0x10d   :  { %1720 = vst [vmem:[#allocation5 + $0x80] sm:$0xff] %v1508_v5  ;;  %1722 = vst [vmem:[#allocation5 + $0x88] sm:$0xff] %v1714_v6  ;;  %v1800_v41 = vor.u32 %v1799_v19, %v1798_v33  ;;  %vm3756_vm0 = vcmp.le.f32.partialorder %v1725_v14, 0.7853982  ;;  %v3760_v4 = vshrl.u32 %v1890_v1, 30  ;;  %v2162_v29 = vshrl.u32 %v2161_v28, 5 }
 0x10e   :  { %v1803_v24 = vshll.u32 %v1802_v62, 23  ;;  %v2164_v50 = vsub.s32 32, %v2163_v9  ;;  %v3764_v16 = vsel %vm3756_vm0, 0, %v1812_v30  ;;  %v2156_v8 = vand.u32 8388607, %v2149_v31  ;;  %v2792_v5 = vld [vmem:[#allocation5 + $0x8] sm:$0xff] }
 0x10f   :  { %v1807_v12 = vcvt.s32.f32 %v1800_v41  ;;  %v1892_v59 = vshll.u32 %v3760_v4, 30  ;;  %v2166_v35 = vshll.u32 %v2840_v32, %v2163_v9  ;;  %v2169_v27 = vshll.u32 %v2841_v34, %v2163_v9 }
 0x110   :  { %v1804_v37 = vor.u32 4788187, %v1803_v24  ;;  %v2167_v14 = vshrl.u32 %v2841_v34, %v2164_v50  ;;  %v2170_v22 = vshrl.u32 %v2842_v36, %v2164_v50  ;;  %v2172_v20 = vshll.u32 %v2842_v36, %v2163_v9 }
 0x111   :  { %v2173_v11 = vshrl.u32 %v2843_v38, %v2164_v50  ;;  %v3775_v43 = vsub.s32 %v1889_v61, %v1892_v59  ;;  %v2175_v2 = vshll.u32 %v2843_v38, %v2163_v9  ;;  %v2176_v7 = vshrl.u32 %v2844_v40, %v2164_v50 }
 0x112   :  { %v1805_v56 = vand.u32 2147483647, %v1804_v37  ;;  %v2157_v17 = vor.u32 8388608, %v2156_v8  ;;  %v2178_v39 = vshll.u32 %v2844_v40, %v2163_v9  ;;  %v1818_v26 = vadd.s32 3, %v3764_v16 }
 0x113   :  { %v1895_v47 = vsub.s32 0, %v3775_v43  ;;  %v2165_v46 = vshrl.u32 %v2840_v32, %v2164_v50  ;;  %v2168_v42 = vor.u32 %v2167_v14, %v2166_v35  ;;  %v2171_v44 = vor.u32 %v2170_v22, %v2169_v27 }
 0x114   :  { %v1808_v49 = vmul.f32 %v1807_v12, %v1805_v56  ;;  %v2174_v63 = vor.u32 %v2173_v11, %v2172_v20  ;;  %v2179_v52 = vshrl.u32 %v2845_v48, %v2164_v50  ;;  %v2177_v53 = vor.u32 %v2176_v7, %v2175_v2 }
 0x115   :  { %v2657_v28 = vmin.u32 %v1895_v47, %v3775_v43  ;;  %vm2181_vm1 = vcmp.lt.s32.totalorder %v2162_v29, 1  ;;  %vm2184_vm2 = vcmp.lt.s32.totalorder %v2162_v29, 4  ;;  %v2197_v18 = vshll.u32 %v2157_v17, 8 }
 0x116   :  { %v1809_v45 = vxor.u32 2147483648, %v1808_v49  ;;  %v2180_v57 = vor.u32 %v2179_v52, %v2178_v39  ;;  %v2186_v33 = vsel %vm2184_vm2, %v2174_v63, 2102212464  ;;  %vm2182_vm3 = vcmp.lt.s32.totalorder %v2162_v29, 2 }
 0x117   :  { %v1897_v58 = vclz %v2657_v28  ;;  %vm2183_vm9 = vcmp.lt.s32.totalorder %v2162_v29, 3  ;;  %v2185_v55 = vsel %vm2181_vm1, %v2165_v46, %v2168_v42  ;;  %v2189_v25 = vsel %vm2181_vm1, %v2168_v42, %v2171_v44 }
 0x118   :  { %v1810_v60 = vsel %vm1727_vm7, %v1809_v45, %v1808_v49  ;;  %v2187_v21 = vsel %vm2183_vm9, %v2171_v44, %v2186_v33  ;;  %v2190_v61 = vsel %vm2184_vm2, %v2177_v53, 920167782  ;;  %v3795_v6 = vmul.f32 100.53097, %v2792_v5 }
 0x119   :  { %v1813_v10 = vsel %vm3756_vm0, %v3531_v23, %v1810_v60  ;;  %v2658_v19 = vadd.s32 4294967294, %v1897_v58  ;;  %v1885_v62 = vadd.s32 %v3723_v0, %v3731_v15  ;;  %v2191_v41 = vsel %vm2183_vm9, %v2174_v63, %v2190_v61 }
 0x11a   :  { %2774 = vcosq.f32 %v1813_v10  ;;  %v2193_v30 = vsel %vm2181_vm1, %v2171_v44, %v2174_v63  ;;  %v2194_v1 = vsel %vm2184_vm2, %v2180_v57, 1326507024  ;;  %v2188_v9 = vsel %vm2182_vm3, %v2185_v55, %v2187_v21 }
 0x11b   :  { %2776 = vsinq.f32 %v1813_v10  ;;  %vm2659_vm4 = vcmp.lt.s32.totalorder %v2658_v19, 0  ;;  %v2192_v24 = vsel %vm2182_vm3, %v2189_v25, %v2191_v41  ;;  %v2195_v54 = vsel %vm2183_vm9, %v2177_v53, %v2194_v1 }
 0x11c   :  { %v1900_v50 = vsel %vm2659_vm4, 0, %v2658_v19  ;;  %v2196_v37 = vsel %vm2182_vm3, %v2193_v30, %v2195_v54  ;;  %v3806_v12 = vmul.u32.u64.low %v2197_v18, %v2192_v24  ;;  %v3807_v8 = vmul.u32.u64.high %v2197_v18, %v2192_v24, %v3806_v12 }
 0x11d   :  { %v1901_v0 = vsub.s32 32, %v1900_v50  ;;  %v1902_v15 = vshll.u32 %v3775_v43, %v1900_v50  ;;  %v1905_v59 = vsub.s32 4294967266, %v1900_v50  ;;  %v2256_v35 = vand.u32 2139095040, %v3795_v6 }
 0x11e   :  { %v3812_v14 = vmul.u32.u64.low %v2197_v18, %v2196_v37  ;;  %v3813_v27 = vmul.u32.u64.high %v2197_v18, %v2196_v37, %v3812_v14  ;;  %vm1817_vm5 = vweird.f32 %v3531_v23  ;;  %v2026_v11 = vand.u32 3, %v3764_v16 }
 0x11f   :  { %v1903_v56 = vshrl.u32 %v1885_v62, %v1901_v0  ;;  %v1906_v22 = vadd.s32 127, %v1905_v59  ;;  %v2257_v20 = vshrl.u32 %v2256_v35, 23  ;;  %v2204_v29 = vmul.u32 %v2197_v18, %v2188_v9 }
 0x120   :  { %v2207_v2 = vadd.s32 1, %v3807_v8  ;;  %v1819_v7 = vand.u32 3, %v1818_v26  ;;  %vm3820_vm6 = vcmp.le.f32.partialorder %v1829_v51, 0.7853982  ;;  %vm1831_vm7 = vcmp.lt.s32.totalorder %v3587_v3, 0 }
 0x121   :  { %v1904_v49 = vor.u32 %v1903_v56, %v1902_v15  ;;  %v1907_v17 = vshll.u32 %v1906_v22, 23  ;;  %v2672_v43 = vadd.s32 4294967169, %v2257_v20  ;;  %v1915_v47 = vsub.s32 4, %v3760_v4 }
 0x122   :  { %vm2206_vm8 = vc.u32 %v3813_v27, %v3806_v12  ;;  %vm2027_vm12 = vcmp.lt.s32.totalorder %v2026_v11, 2  ;;  %vm2028_vm10 = vcmp.eq.s32.totalorder %v2026_v11, 0  ;;  %vm2031_vm11 = vcmp.eq.s32.totalorder %v2026_v11, 2 }
 0x123   :  { %v1908_v16 = vor.u32 4788187, %v1907_v17  ;;  %v1911_v46 = vcvt.s32.f32 %v1904_v49  ;;  %v2208_v26 = vsel %vm2206_vm8, %v2207_v2, %v3807_v8  ;;  %v2263_v42 = vadd.s32 1, %v2672_v43 }
 0x124   :  { %v2209_v45 = vadd.s32 %v2208_v26, %v2204_v29  ;;  %vm1821_vm13 = vcmp.eq.s32.totalorder %v1819_v7, 0  ;;  %vm1824_vm14 = vcmp.eq.s32.totalorder %v1819_v7, 2  ;;  %v1916_v28 = vsel %vm1831_vm7, %v1915_v47, %v3760_v4 }
 0x125   :  { %v1909_v44 = vand.u32 2147483647, %v1908_v16  ;;  %vm2264_vm15 = vcmp.gt.s32.totalorder %v2263_v42, 0  ;;  %vm1820_vm0 = vcmp.lt.s32.totalorder %v1819_v7, 2  ;;  %v2253_v21 = vand.u32 2147483647, %v3795_v6 }
 0x126   :  { %v2210_v53 = vadd.s32 536870912, %v2209_v45  ;;  %v2265_v60 = vsel %vm2264_vm15, %v2263_v42, 0  ;;  %v1918_v4 = vsel %vm3820_vm6, 0, %v1916_v28  ;;  %vm2150_vm15 = vcmp.le.f32.partialorder %v2149_v31, 0.7853982 }
 0x127   :  { %v2775_v51 = vpop.eup %2774  ;;  %v1912_v33 = vmul.f32 %v1911_v46, %v1909_v44  ;;  %v2267_v18 = vand.u32 31, %v2265_v60  ;;  %v1922_v50 = vadd.s32 3, %v1918_v4  ;;  %v2260_v8 = vand.u32 8388607, %v2253_v21 }
 0x128   :  { %v2777_v63 = vpop.eup %2776  ;;  %v1825_v52 = vxor.u32 2147483648, %v2775_v51  ;;  %v3833_v55 = vshrl.u32 %v2210_v53, 30  ;;  %v3855_v0 = vand.u32 3, %v1918_v4  ;;  %v2266_v14 = vshrl.u32 %v2265_v60, 5 }
 0x129   :  { %v1822_v57 = vxor.u32 2147483648, %v2777_v63  ;;  %v1913_v61 = vxor.u32 2147483648, %v1912_v33  ;;  %v2268_v30 = vsub.s32 32, %v2267_v18  ;;  %v2270_v23 = vshll.u32 %v2840_v32, %v2267_v18 }
 0x12a   :  { %v1826_v10 = vsel %vm1824_vm14, %v1825_v52, %v2777_v63  ;;  %v2033_v58 = vsel %vm2031_vm11, %v1825_v52, %v2777_v63  ;;  %v2212_v41 = vshll.u32 %v3833_v55, 30  ;;  %v2273_v35 = vshll.u32 %v2841_v34, %v2267_v18 }
 0x12b   :  { %v1823_v25 = vsel %vm1821_vm13, %v2775_v51, %v1822_v57  ;;  %v2030_v19 = vsel %vm2028_vm10, %v2775_v51, %v1822_v57  ;;  %v1914_v24 = vsel %vm1831_vm7, %v1913_v61, %v1912_v33  ;;  %v2271_v59 = vshrl.u32 %v2841_v34, %v2268_v30 }
 0x12c   :  { %v1827_v5 = vsel %vm1820_vm0, %v1823_v25, %v1826_v10  ;;  %v2034_v62 = vsel %vm2027_vm12, %v2030_v19, %v2033_v58  ;;  %v1917_v54 = vsel %vm3820_vm6, %v3587_v3, %v1914_v24  ;;  %v3851_v37 = vsub.s32 %v2209_v45, %v2212_v41 }
 0x12d   :  { %v1828_v1 = vsel %vm1817_vm5, nan, %v1827_v5  ;;  %v2035_v9 = vsel %vm1817_vm5, nan, %v2034_v62  ;;  %2778 = vcosq.f32 %v1917_v54  ;;  %v2274_v56 = vshrl.u32 %v2842_v36, %v2268_v30 }
 0x12e   :  { %2140 = vst [vmem:[#allocation5 + $0x90] sm:$0xff] %v1828_v1  ;;  %2142 = vst [vmem:[#allocation5 + $0x98] sm:$0xff] %v2035_v9  ;;  %2780 = vsinq.f32 %v1917_v54  ;;  %v2215_v15 = vsub.s32 0, %v3851_v37  ;;  %v2276_v22 = vshll.u32 %v2842_v36, %v2267_v18  ;;  %v2277_v20 = vshrl.u32 %v2843_v38, %v2268_v30 }
 0x12f   :  { %v3864_v11 = vand.u32 3, %v1922_v50  ;;  %v2261_v2 = vor.u32 8388608, %v2260_v8  ;;  %v2279_v7 = vshll.u32 %v2843_v38, %v2267_v18  ;;  %vm2134_vm1 = vcmp.eq.s32.totalorder %v3855_v0, 2 }
 0x130   :  { %v2669_v29 = vmin.u32 %v2215_v15, %v3851_v37  ;;  %v2272_v17 = vor.u32 %v2271_v59, %v2270_v23  ;;  %v2275_v43 = vor.u32 %v2274_v56, %v2273_v35  ;;  %v2278_v34 = vor.u32 %v2277_v20, %v2276_v22 }
 0x131   :  { %vm2131_vm2 = vcmp.eq.s32.totalorder %v3855_v0, 0  ;;  %v2280_v39 = vshrl.u32 %v2844_v40, %v2268_v30  ;;  %v2282_v36 = vshll.u32 %v2844_v40, %v2267_v18  ;;  %v2283_v47 = vshrl.u32 %v2845_v48, %v2268_v30 }
 0x132   :  { %v2217_v49 = vclz %v2669_v29  ;;  %vm2285_vm3 = vcmp.lt.s32.totalorder %v2266_v14, 1  ;;  %vm1924_vm9 = vcmp.lt.s32.totalorder %v3864_v11, 2  ;;  %vm2130_vm4 = vcmp.lt.s32.totalorder %v3855_v0, 2 }
 0x133   :  { %v2205_v38 = vadd.s32 %v3806_v12, %v3813_v27  ;;  %vm2288_vm5 = vcmp.lt.s32.totalorder %v2266_v14, 4  ;;  %v2301_v46 = vshll.u32 %v2261_v2, 8  ;;  %vm1921_vm6 = vweird.f32 %v3587_v3 }
 0x134   :  { %v2670_v16 = vadd.s32 4294967294, %v2217_v49  ;;  %v2269_v26 = vshrl.u32 %v2840_v32, %v2268_v30  ;;  %v2281_v42 = vor.u32 %v2280_v39, %v2279_v7  ;;  %v2284_v45 = vor.u32 %v2283_v47, %v2282_v36 }
 0x135   :  { %vm2287_vm7 = vcmp.lt.s32.totalorder %v2266_v14, 3  ;;  %vm2286_vm12 = vcmp.lt.s32.totalorder %v2266_v14, 2  ;;  %v2290_v40 = vsel %vm2288_vm5, %v2278_v34, 2102212464  ;;  %v2293_v48 = vsel %vm2285_vm3, %v2272_v17, %v2275_v43 }
 0x136   :  { %vm2671_vm8 = vcmp.lt.s32.totalorder %v2670_v16, 0  ;;  %v2294_v44 = vsel %vm2288_vm5, %v2281_v42, 920167782  ;;  %v2297_v63 = vsel %vm2285_vm3, %v2275_v43, %v2278_v34  ;;  %v2298_v12 = vsel %vm2288_vm5, %v2284_v45, 1326507024 }
 0x137   :  { %v2220_v51 = vsel %vm2671_vm8, 0, %v2670_v16  ;;  %v2295_v53 = vsel %vm2287_vm7, %v2278_v34, %v2294_v44  ;;  %vm1928_vm10 = vcmp.eq.s32.totalorder %v3864_v11, 2  ;;  %v2289_v32 = vsel %vm2285_vm3, %v2269_v26, %v2272_v17 }
 0x138   :  { %v2221_v27 = vsub.s32 32, %v2220_v51  ;;  %v2222_v52 = vshll.u32 %v3851_v37, %v2220_v51  ;;  %v2225_v28 = vsub.s32 4294967266, %v2220_v51  ;;  %v2291_v60 = vsel %vm2287_vm7, %v2275_v43, %v2290_v40 }
 0x139   :  { %v2299_v57 = vsel %vm2287_vm7, %v2281_v42, %v2298_v12  ;;  %v2296_v58 = vsel %vm2286_vm12, %v2293_v48, %v2295_v53  ;;  %vm1925_vm11 = vcmp.eq.s32.totalorder %v3864_v11, 0  ;;  %v2292_v1 = vsel %vm2286_vm12, %v2289_v32, %v2291_v60 }
 0x13a   :  { %v2779_v33 = vpop.eup %2778  ;;  %v2223_v18 = vshrl.u32 %v2205_v38, %v2221_v27  ;;  %v2226_v10 = vadd.s32 127, %v2225_v28  ;;  %v2300_v25 = vsel %vm2286_vm12, %v2297_v63, %v2299_v57  ;;  %v2308_v14 = vmul.u32 %v2301_v46, %v2292_v1 }
 0x13b   :  { %v2781_v19 = vpop.eup %2780  ;;  %v1929_v61 = vxor.u32 2147483648, %v2779_v33  ;;  %v3890_v4 = vmul.u32.u64.low %v2301_v46, %v2300_v25  ;;  %v3891_v5 = vmul.u32.u64.high %v2301_v46, %v2300_v25, %v3890_v4  ;;  %vm2151_vm14 = vcmp.lt.s32.totalorder %v3598_v13, 0 }
 0x13c   :  { %v1926_v62 = vxor.u32 2147483648, %v2781_v19  ;;  %v2224_v41 = vor.u32 %v2223_v18, %v2222_v52  ;;  %v2227_v30 = vshll.u32 %v2226_v10, 23  ;;  %v2235_v0 = vsub.s32 4, %v3833_v55 }
 0x13d   :  { %v1930_v9 = vsel %vm1928_vm10, %v1929_v61, %v2781_v19  ;;  %v2136_v24 = vsel %vm2134_vm1, %v1929_v61, %v2781_v19  ;;  %v3898_v54 = vmul.u32.u64.low %v2301_v46, %v2296_v58  ;;  %v3899_v50 = vmul.u32.u64.high %v2301_v46, %v2296_v58, %v3898_v54 }
 0x13e   :  { %v1927_v37 = vsel %vm1925_vm11, %v2779_v33, %v1926_v62  ;;  %v2133_v8 = vsel %vm2131_vm2, %v2779_v33, %v1926_v62  ;;  %v2228_v23 = vor.u32 4788187, %v2227_v30  ;;  %v2231_v15 = vcvt.s32.f32 %v2224_v41 }
 0x13f   :  { %v1931_v59 = vsel %vm1924_vm9, %v1927_v37, %v1930_v9  ;;  %v2137_v35 = vsel %vm2130_vm4, %v2133_v8, %v2136_v24  ;;  %vm2310_vm13 = vc.u32 %v3891_v5, %v3898_v54  ;;  %v2311_v29 = vadd.s32 1, %v3899_v50 }
 0x140   :  { %v1932_v56 = vsel %vm1921_vm6, nan, %v1931_v59  ;;  %v2138_v22 = vsel %vm1921_vm6, nan, %v2137_v35  ;;  %v2229_v20 = vand.u32 2147483647, %v2228_v23  ;;  %v2236_v43 = vsel %vm2151_vm14, %v2235_v0, %v3833_v55 }
 0x141   :  { %2144 = vst [vmem:[#allocation5 + $0xa0] sm:$0xff] %v1932_v56  ;;  %2146 = vst [vmem:[#allocation5 + $0xa8] sm:$0xff] %v2138_v22  ;;  %v2312_v11 = vsel %vm2310_vm13, %v2311_v29, %v3899_v50  ;;  %v2238_v36 = vsel %vm2150_vm15, 0, %v2236_v43  ;;  %vm2241_vm0 = vweird.f32 %v3598_v13  ;;  %v2309_v44 = vadd.s32 %v3898_v54, %v3891_v5 }
 0x142   :  { %v2232_v2 = vmul.f32 %v2231_v15, %v2229_v20  ;;  %v2313_v3 = vadd.s32 %v2312_v11, %v2308_v14  ;;  %v2242_v16 = vadd.s32 3, %v2238_v36  ;;  %v2450_v45 = vand.u32 3, %v2238_v36 }
 0x143   :  { %vm2255_vm7 = vcmp.lt.s32.totalorder %v3795_v6, 0  ;;  %vm2254_vm8 = vcmp.le.f32.partialorder %v2253_v21, 0.7853982 }
 0x144   :  { %v2233_v7 = vxor.u32 2147483648, %v2232_v2  ;;  %v2314_v17 = vadd.s32 536870912, %v2313_v3  ;;  %v2243_v42 = vand.u32 3, %v2242_v16  ;;  %vm2452_vm2 = vcmp.eq.s32.totalorder %v2450_v45, 0 }
 0x145   :  { %vm2455_vm3 = vcmp.eq.s32.totalorder %v2450_v45, 2  ;;  %vm2451_vm6 = vcmp.lt.s32.totalorder %v2450_v45, 2 }
 0x146   :  { %v2234_v49 = vsel %vm2151_vm14, %v2233_v7, %v2232_v2  ;;  %v2315_v39 = vshrl.u32 %v2314_v17, 30  ;;  %vm2248_vm1 = vcmp.eq.s32.totalorder %v2243_v42, 2  ;;  %vm2245_vm9 = vcmp.eq.s32.totalorder %v2243_v42, 0 }
 0x147   :  { %v2237_v34 = vsel %vm2150_vm15, %v3598_v13, %v2234_v49  ;;  %vm2244_vm5 = vcmp.lt.s32.totalorder %v2243_v42, 2 }
 0x148   :  { %2782 = vcosq.f32 %v2237_v34  ;;  %v2316_v47 = vshll.u32 %v2315_v39, 30  ;;  %v2339_v1 = vsub.s32 4, %v2315_v39 }
 0x149   :  { %2784 = vsinq.f32 %v2237_v34 }
 0x14a   :  { %v2317_v38 = vsub.s32 %v2313_v3, %v2316_v47  ;;  %v2340_v54 = vsel %vm2255_vm7, %v2339_v1, %v2315_v39 }
 0x14b   :  { %v2342_v50 = vsel %vm2254_vm8, 0, %v2340_v54 }
 0x14c   :  { %v2319_v46 = vsub.s32 0, %v2317_v38  ;;  %v2346_v37 = vadd.s32 3, %v2342_v50  ;;  %v2553_v23 = vand.u32 3, %v2342_v50 }
 0x14e   :  { %v2673_v26 = vmin.u32 %v2319_v46, %v2317_v38  ;;  %v2347_v8 = vand.u32 3, %v2346_v37  ;;  %vm2558_vm10 = vcmp.eq.s32.totalorder %v2553_v23, 2  ;;  %vm2555_vm13 = vcmp.eq.s32.totalorder %v2553_v23, 0 }
 0x14f   :  { %vm2554_vm15 = vcmp.lt.s32.totalorder %v2553_v23, 2 }
 0x150   :  { %v2321_v31 = vclz %v2673_v26  ;;  %vm2352_vm12 = vcmp.eq.s32.totalorder %v2347_v8, 2  ;;  %vm2349_vm11 = vcmp.eq.s32.totalorder %v2347_v8, 0  ;;  %vm2348_vm14 = vcmp.lt.s32.totalorder %v2347_v8, 2 }
 0x152   :  { %v2674_v40 = vadd.s32 4294967294, %v2321_v31 }
 0x154   :  { %vm2675_vm4 = vcmp.lt.s32.totalorder %v2674_v40, 0 }
 0x155   :  { %v2783_v48 = vpop.eup %2782  ;;  %v2324_v12 = vsel %vm2675_vm4, 0, %v2674_v40 }
 0x156   :  { %v2785_v55 = vpop.eup %2784  ;;  %v2249_v51 = vxor.u32 2147483648, %v2783_v48  ;;  %v2325_v28 = vsub.s32 32, %v2324_v12  ;;  %v2326_v53 = vshll.u32 %v2317_v38, %v2324_v12  ;;  %v2329_v57 = vsub.s32 4294967266, %v2324_v12 }
 0x157   :  { %v2246_v63 = vxor.u32 2147483648, %v2785_v55 }
 0x158   :  { %v2250_v27 = vsel %vm2248_vm1, %v2249_v51, %v2785_v55  ;;  %v2457_v52 = vsel %vm2455_vm3, %v2249_v51, %v2785_v55  ;;  %v2327_v10 = vshrl.u32 %v2309_v44, %v2325_v28  ;;  %v2330_v19 = vadd.s32 127, %v2329_v57 }
 0x159   :  { %v2247_v32 = vsel %vm2245_vm9, %v2783_v48, %v2246_v63  ;;  %v2454_v60 = vsel %vm2452_vm2, %v2783_v48, %v2246_v63 }
 0x15a   :  { %v2251_v33 = vsel %vm2244_vm5, %v2247_v32, %v2250_v27  ;;  %v2458_v18 = vsel %vm2451_vm6, %v2454_v60, %v2457_v52  ;;  %v2328_v61 = vor.u32 %v2327_v10, %v2326_v53  ;;  %v2331_v4 = vshll.u32 %v2330_v19, 23 }
 0x15b   :  { %v2252_v58 = vsel %vm2241_vm0, nan, %v2251_v33  ;;  %v2459_v25 = vsel %vm2241_vm0, nan, %v2458_v18  ;;  %vm2345_vm0 = vweird.f32 %v3795_v6 }
 0x15c   :  { %2564 = vst [vmem:[#allocation5 + $0xb0] sm:$0xff] %v2252_v58  ;;  %2566 = vst [vmem:[#allocation5 + $0xb8] sm:$0xff] %v2459_v25  ;;  %v2332_v5 = vor.u32 4788187, %v2331_v4  ;;  %v2335_v62 = vcvt.s32.f32 %v2328_v61 }
 0x15e   :  { %v2333_v41 = vand.u32 2147483647, %v2332_v5 }
 0x160   :  { %v2336_v30 = vmul.f32 %v2335_v62, %v2333_v41 }
 0x162   :  { %v2337_v9 = vxor.u32 2147483648, %v2336_v30 }
 0x164   :  { %v2338_v24 = vsel %vm2255_vm7, %v2337_v9, %v2336_v30 }
 0x165   :  { %v2341_v13 = vsel %vm2254_vm8, %v3795_v6, %v2338_v24 }
 0x166   :  { %2786 = vcosq.f32 %v2341_v13 }
 0x167   :  { %2788 = vsinq.f32 %v2341_v13 }
 0x173   :  { %v2787_v15 = vpop.eup %2786 }
 0x174   :  { %v2789_v59 = vpop.eup %2788  ;;  %v2353_v35 = vxor.u32 2147483648, %v2787_v15 }
 0x175   :  { %v2350_v21 = vxor.u32 2147483648, %v2789_v59 }
 0x176   :  { %v2354_v14 = vsel %vm2352_vm12, %v2353_v35, %v2789_v59  ;;  %v2560_v56 = vsel %vm2558_vm10, %v2353_v35, %v2789_v59 }
 0x177   :  { %v2351_v22 = vsel %vm2349_vm11, %v2787_v15, %v2350_v21  ;;  %v2557_v20 = vsel %vm2555_vm13, %v2787_v15, %v2350_v21 }
 0x178   :  { %v2355_v29 = vsel %vm2348_vm14, %v2351_v22, %v2354_v14  ;;  %v2561_v2 = vsel %vm2554_vm15, %v2557_v20, %v2560_v56 }
 0x179   :  { %v2356_v0 = vsel %vm2345_vm0, nan, %v2355_v29  ;;  %v2562_v11 = vsel %vm2345_vm0, nan, %v2561_v2 }
 0x17a   :  { %2568 = vst [vmem:[#allocation5 + $0xc0] sm:$0xff] %v2356_v0  ;;  %2570 = vst [vmem:[#allocation5 + $0xc8] sm:$0xff] %v2562_v11 }
 0x17b   :  { %2824 = shalt.err (!%p2821_p9)
}
 0x17c   :  { %2582 = dma.vmem_to_hbm [thread:$0]  %s2577_s13, 3328, %s3939_s1, [#allocation4], %s2838_s9, %s2838_s9, %s2839_s10  }
 0x17d   :  { %2835 = dma.done.wait [#allocation4], 3328  }
 0x17e   :  { %2836 = vsyncadd [#allocation4], 4294963968 }
 0x17f   :  { %2586 = vsyncpa [#allocation3], 1 }
 0x180   :  { %2587 = vsyncpa [#allocation4], 1 }

</bundles_post_ra>
